<compile_context>
chip_gen: v7x
topology: tpu7x:2x2x1
jax: 0.10.0
libtpu: 0.0.40
codegen_flags: <defaults>
</compile_context>

<pallas_src>
import math

import jax
import jax.numpy as jnp
from jax import lax
from jax.experimental import pallas as pl
from jax.experimental.pallas import tpu as pltpu

PI = 3.14          # the PyTorch module uses the literal 3.14, not math.pi
TWO_PI = 2.0 * PI


def _model_kernel(x_ref, w1_ref, b1_ref, w2_ref, b2_ref, w3_ref, b3_ref,
                  w4_ref, b4_ref, out_ref):
    tn = x_ref.shape[1]
    x = x_ref[...]                                   # (1, TN), batch on lanes

    # --- input_process: feature values and their exact d/dx (lane-dense) ---
    x2 = x * x
    x3 = x2 * x
    x4 = x2 * x2
    sp = jnp.sin(PI * x)
    cp = jnp.cos(PI * x)
    s2 = 2.0 * sp * cp                               # sin(2 * 3.14 * x)
    c2 = 1.0 - 2.0 * sp * sp                         # cos(2 * 3.14 * x)

    feats = jnp.concatenate(
        [x, x2, x3, x4, sp, cp, s2, c2], axis=0)                      # (8, TN)
    dfeats = jnp.concatenate(
        [jnp.ones_like(x), 2.0 * x, 3.0 * x2, 4.0 * x3,
         PI * cp, -PI * sp, TWO_PI * c2, -TWO_PI * s2], axis=0)       # (8, TN)

    # Lane-stack [value | derivative] so each layer is one MXU matmul.
    z = jnp.concatenate([feats, dfeats], axis=1)                      # (8, 2*TN)

    # Value-lane mask, hoisted out of the layer loop (broadcast is not CSE'd).
    is_val = lax.broadcasted_iota(jnp.int32, (128, 2 * tn), 1) < tn

    def hidden_layer(z, w, b):
        # w: (128, in) PyTorch orientation, z: (in, 2*TN)
        y = jnp.dot(w, z, preferred_element_type=jnp.float32)         # (128, 2*TN)
        y = jnp.where(is_val, y + b, y)          # bias only on the value lanes
        # ReLU gate comes from the value lanes; shift-by-half brings the value
        # half onto the derivative lanes (XLU roll, separate VLIW slot).
        yv = jnp.where(is_val, y, pltpu.roll(y, tn, 1))
        return jnp.where(yv > 0.0, y, 0.0)       # value: ReLU, deriv: ReLU' gate

    z = hidden_layer(z, w1_ref[...], b1_ref[...])                     # 8   -> 128
    z = hidden_layer(z, w2_ref[...], b2_ref[...])                     # 128 -> 128
    z = hidden_layer(z, w3_ref[...], b3_ref[...])                     # 128 -> 128

    # Output layer (128 -> 2), no activation, scaled by 10.
    y = jnp.dot(w4_ref[...], z, preferred_element_type=jnp.float32)   # (2, 2*TN)
    pos = (y[:, :tn] + b4_ref[...]) * 10.0                            # (2, TN)
    vel = y[:, tn:] * 10.0                                            # (2, TN)
    out_ref[...] = jnp.concatenate([pos, vel], axis=0)                # (4, TN)


def _round_up(a, b):
    return (a + b - 1) // b * b


def init_params(key):
    """Parameter init matching the PyTorch __init__ shapes/bounds.

    Weights kept in the native PyTorch (out, in) orientation (the kernel does
    y = W @ z with the batch on the lane axis); biases stored as (out, 1).
      w1 (128,8)   b1 (128,1)
      w2 (128,128) b2 (128,1)
      w3 (128,128) b3 (128,1)
      w4 (2,128)   b4 (2,1)
    """
    k1, k2, k3, k4 = jax.random.split(key, 4)
    s8 = 1.0 / math.sqrt(8.0)
    s128 = 1.0 / math.sqrt(128.0)
    w1 = jax.random.uniform(k1, (128, 8), jnp.float32, -s8, s8)
    w2 = jax.random.uniform(k2, (128, 128), jnp.float32, -s128, s128)
    w3 = jax.random.uniform(k3, (128, 128), jnp.float32, -s128, s128)
    w4 = jax.random.uniform(k4, (2, 128), jnp.float32, -s128, s128)
    b1 = jnp.zeros((128, 1), jnp.float32)
    b2 = jnp.zeros((128, 1), jnp.float32)
    b3 = jnp.zeros((128, 1), jnp.float32)
    b4 = jnp.zeros((2, 1), jnp.float32)
    return (w1, b1, w2, b2, w3, b3, w4, b4)


def model_forward(x, params, tile_n=1024):
    """x: (N, 1) float32  ->  (N, 4) float32 = [pos1, pos2, vel1, vel2]."""
    n = x.shape[0]
    n128 = _round_up(max(n, 1), 128)              # lane alignment of value/deriv split
    tn = min(_round_up(tile_n, 128), n128)
    n_pad = _round_up(n128, tn)
    # Keep >= 2 grid steps when the batch allows: v7x has 2 TensorCores sharing
    # the "parallel" grid axis; a single-step grid leaves one core idle.
    if n_pad // tn < 2 and tn > 128:
        tn = max(128, _round_up(tn // 2, 128))
        n_pad = _round_up(n128, tn)

    if n_pad != n:
        x = jnp.pad(x, ((0, n_pad - n), (0, 0)))
    xt = x.T                                       # (1, n_pad): batch on lanes

    def wspec(shape):
        # Full-array weight block, constant index_map -> fetched once, resident.
        return pl.BlockSpec(shape, lambda i: (0, 0))

    w1, b1, w2, b2, w3, b3, w4, b4 = params
    n_weight_bytes = sum(int(p.size) * 4 for p in params)
    cost = pl.CostEstimate(
        flops=int(4 * n_pad * (8 * 128 + 128 * 128 + 128 * 128 + 128 * 2)),
        transcendentals=int(2 * n_pad),
        bytes_accessed=int(4 * n_pad * (1 + 4)) + n_weight_bytes,
    )

    out = pl.pallas_call(
        _model_kernel,
        out_shape=jax.ShapeDtypeStruct((4, n_pad), jnp.float32),
        grid_spec=pltpu.PrefetchScalarGridSpec(
            num_scalar_prefetch=0,
            grid=(n_pad // tn,),
            in_specs=[
                pl.BlockSpec((1, tn), lambda i: (0, i)),   # x tile (lane-dense)
                wspec((128, 8)), wspec((128, 1)),
                wspec((128, 128)), wspec((128, 1)),
                wspec((128, 128)), wspec((128, 1)),
                wspec((2, 128)), wspec((2, 1)),
            ],
            out_specs=pl.BlockSpec((4, tn), lambda i: (0, i)),
        ),
        compiler_params=pltpu.CompilerParams(
            dimension_semantics=("parallel",)),
        cost_estimate=cost,
    )(xt, *params)
    return out[:, :n].T                            # back to (N, 4)


def _reference_forward(x, params):
    """Pure-JAX reference (value + JVP with ones tangent) for correctness."""
    w1, b1, w2, b2, w3, b3, w4, b4 = params

    def net(xs):
        f = jnp.concatenate(
            [xs, xs**2, xs**3, xs**4,
             jnp.sin(PI * xs), jnp.cos(PI * xs),
             jnp.sin(TWO_PI * xs), jnp.cos(TWO_PI * xs)], axis=1)
        h = jax.nn.relu(f @ w1.T + b1[:, 0])
        h = jax.nn.relu(h @ w2.T + b2[:, 0])
        h = jax.nn.relu(h @ w3.T + b3[:, 0])
        return (h @ w4.T + b4[:, 0]) * 10.0

    pos, vel = jax.jvp(net, (x,), (jnp.ones_like(x),))
    return jnp.concatenate([pos, vel], axis=1)


if __name__ == "__main__":
    key = jax.random.PRNGKey(0)
    pkey, xkey1, xkey2 = jax.random.split(key, 3)
    params = init_params(pkey)

    # Small batch of scalar inputs, consistent with the module's (N, 1) -> (N, 4) contract.
    x_small = jax.random.uniform(xkey1, (8, 1), jnp.float32, -1.0, 1.0)
    out_small = jax.block_until_ready(model_forward(x_small, params))
    ref_small = _reference_forward(x_small, params)
    assert out_small.shape == (8, 4)
    assert jnp.allclose(out_small, ref_small, atol=5e-4, rtol=5e-4)

    # Larger batch, not a multiple of the tile size -> exercises grid (>=2 steps) + padding.
    x_big = jax.random.uniform(xkey2, (1000, 1), jnp.float32, -1.0, 1.0)
    out_big = jax.block_until_ready(model_forward(x_big, params, tile_n=1024))
    ref_big = _reference_forward(x_big, params)
    assert out_big.shape == (1000, 4)
    assert jnp.allclose(out_big, ref_big, atol=5e-4, rtol=5e-4)

    print("KERNEL_OK")
</pallas_src>

<mosaic_0001>
module attributes {stable_mosaic.version = 11 : i64} {
  func.func @_model_kernel(%arg0: i32, %arg1: memref<1x128xf32, #tpu.memory_space<vmem>>, %arg2: memref<128x8xf32, #tpu.memory_space<vmem>>, %arg3: memref<128x1xf32, #tpu.memory_space<vmem>>, %arg4: memref<128x128xf32, #tpu.memory_space<vmem>>, %arg5: memref<128x1xf32, #tpu.memory_space<vmem>>, %arg6: memref<128x128xf32, #tpu.memory_space<vmem>>, %arg7: memref<128x1xf32, #tpu.memory_space<vmem>>, %arg8: memref<2x128xf32, #tpu.memory_space<vmem>>, %arg9: memref<2x1xf32, #tpu.memory_space<vmem>>, %arg10: memref<4x128xf32, #tpu.memory_space<vmem>>) attributes {dimension_semantics = [#tpu.dimension_semantics<parallel>], iteration_bounds = array<i64: 1>, scalar_prefetch = 0 : i64, scratch_operands = 0 : i64, tpu.core_type = #tpu.core_type<tc>, window_params = [{transform_indices = @transform_0, window_bounds = array<i64: 1, 128>}, {pipeline_mode = #tpu.pipeline_mode<synchronous>, transform_indices = @transform_1, window_bounds = array<i64: 128, 8>}, {pipeline_mode = #tpu.pipeline_mode<synchronous>, transform_indices = @transform_2, window_bounds = array<i64: 128, 1>}, {pipeline_mode = #tpu.pipeline_mode<synchronous>, transform_indices = @transform_3, window_bounds = array<i64: 128, 128>}, {pipeline_mode = #tpu.pipeline_mode<synchronous>, transform_indices = @transform_4, window_bounds = array<i64: 128, 1>}, {pipeline_mode = #tpu.pipeline_mode<synchronous>, transform_indices = @transform_5, window_bounds = array<i64: 128, 128>}, {pipeline_mode = #tpu.pipeline_mode<synchronous>, transform_indices = @transform_6, window_bounds = array<i64: 128, 1>}, {pipeline_mode = #tpu.pipeline_mode<synchronous>, transform_indices = @transform_7, window_bounds = array<i64: 2, 128>}, {pipeline_mode = #tpu.pipeline_mode<synchronous>, transform_indices = @transform_8, window_bounds = array<i64: 2, 1>}, {transform_indices = @transform_9, window_bounds = array<i64: 4, 128>}]} {
    %c0 = arith.constant 0 : index
    %c0_0 = arith.constant 0 : index
    %0 = vector.load %arg1[%c0, %c0_0] : memref<1x128xf32, #tpu.memory_space<vmem>>, vector<1x128xf32>
    %1 = arith.mulf %0, %0 : vector<1x128xf32>
    %2 = arith.mulf %1, %0 : vector<1x128xf32>
    %3 = arith.mulf %1, %1 : vector<1x128xf32>
    %cst = arith.constant 3.140000e+00 : f32
    %4 = vector.broadcast %cst : f32 to vector<1x128xf32>
    %5 = arith.mulf %4, %0 : vector<1x128xf32>
    %6 = math.sin %5 : vector<1x128xf32>
    %cst_1 = arith.constant 3.140000e+00 : f32
    %7 = vector.broadcast %cst_1 : f32 to vector<1x128xf32>
    %8 = arith.mulf %7, %0 : vector<1x128xf32>
    %9 = math.cos %8 : vector<1x128xf32>
    %cst_2 = arith.constant 2.000000e+00 : f32
    %10 = vector.broadcast %cst_2 : f32 to vector<1x128xf32>
    %11 = arith.mulf %10, %6 : vector<1x128xf32>
    %12 = arith.mulf %11, %9 : vector<1x128xf32>
    %cst_3 = arith.constant 2.000000e+00 : f32
    %13 = vector.broadcast %cst_3 : f32 to vector<1x128xf32>
    %14 = arith.mulf %13, %6 : vector<1x128xf32>
    %15 = arith.mulf %14, %6 : vector<1x128xf32>
    %cst_4 = arith.constant 1.000000e+00 : f32
    %16 = vector.broadcast %cst_4 : f32 to vector<1x128xf32>
    %17 = arith.subf %16, %15 : vector<1x128xf32>
    %18 = tpu.concatenate %0, %1, %2, %3, %6, %9, %12, %17 in 0 : vector<1x128xf32>, vector<1x128xf32>, vector<1x128xf32>, vector<1x128xf32>, vector<1x128xf32>, vector<1x128xf32>, vector<1x128xf32>, vector<1x128xf32> -> vector<8x128xf32>
    %cst_5 = arith.constant 1.000000e+00 : f32
    %19 = vector.broadcast %cst_5 : f32 to vector<1x128xf32>
    %cst_6 = arith.constant 2.000000e+00 : f32
    %20 = vector.broadcast %cst_6 : f32 to vector<1x128xf32>
    %21 = arith.mulf %20, %0 : vector<1x128xf32>
    %cst_7 = arith.constant 3.000000e+00 : f32
    %22 = vector.broadcast %cst_7 : f32 to vector<1x128xf32>
    %23 = arith.mulf %22, %1 : vector<1x128xf32>
    %cst_8 = arith.constant 4.000000e+00 : f32
    %24 = vector.broadcast %cst_8 : f32 to vector<1x128xf32>
    %25 = arith.mulf %24, %2 : vector<1x128xf32>
    %cst_9 = arith.constant 3.140000e+00 : f32
    %26 = vector.broadcast %cst_9 : f32 to vector<1x128xf32>
    %27 = arith.mulf %26, %9 : vector<1x128xf32>
    %cst_10 = arith.constant -3.140000e+00 : f32
    %28 = vector.broadcast %cst_10 : f32 to vector<1x128xf32>
    %29 = arith.mulf %28, %6 : vector<1x128xf32>
    %cst_11 = arith.constant 6.280000e+00 : f32
    %30 = vector.broadcast %cst_11 : f32 to vector<1x128xf32>
    %31 = arith.mulf %30, %17 : vector<1x128xf32>
    %cst_12 = arith.constant -6.280000e+00 : f32
    %32 = vector.broadcast %cst_12 : f32 to vector<1x128xf32>
    %33 = arith.mulf %32, %12 : vector<1x128xf32>
    %34 = tpu.concatenate %19, %21, %23, %25, %27, %29, %31, %33 in 0 : vector<1x128xf32>, vector<1x128xf32>, vector<1x128xf32>, vector<1x128xf32>, vector<1x128xf32>, vector<1x128xf32>, vector<1x128xf32>, vector<1x128xf32> -> vector<8x128xf32>
    %35 = tpu.concatenate %18, %34 in 1 : vector<8x128xf32>, vector<8x128xf32> -> vector<8x256xf32>
    %36 = tpu.iota {dimensions = array<i32: 1>} : vector<128x256xi32>
    %c128_i32 = arith.constant 128 : i32
    %37 = vector.broadcast %c128_i32 : i32 to vector<128x256xi32>
    %38 = arith.cmpi slt, %36, %37 : vector<128x256xi32>
    %c0_13 = arith.constant 0 : index
    %c0_14 = arith.constant 0 : index
    %39 = vector.load %arg2[%c0_13, %c0_14] : memref<128x8xf32, #tpu.memory_space<vmem>>, vector<128x8xf32>
    %c0_15 = arith.constant 0 : index
    %c0_16 = arith.constant 0 : index
    %40 = vector.load %arg3[%c0_15, %c0_16] : memref<128x1xf32, #tpu.memory_space<vmem>>, vector<128x1xf32>
    %cst_17 = arith.constant dense<0.000000e+00> : vector<128x256xf32>
    %41 = tpu.matmul %39, %35, %cst_17 {dimension_numbers = #tpu.dot_dimension_numbers<[1], [0], [0], [1], [0, 0, 1, 1], [], []>} : vector<128x8xf32>, vector<8x256xf32>, vector<128x256xf32> -> vector<128x256xf32>
    %42 = vector.broadcast %40 : vector<128x1xf32> to vector<128x256xf32>
    %43 = arith.addf %41, %42 : vector<128x256xf32>
    %44 = arith.select %38, %43, %41 : vector<128x256xi1>, vector<128x256xf32>
    %c128_i32_18 = arith.constant 128 : i32
    %45 = tpu.dynamic_rotate %44 by %c128_i32_18 dim 1 : vector<128x256xf32>, i32 -> vector<128x256xf32>
    %46 = arith.select %38, %44, %45 : vector<128x256xi1>, vector<128x256xf32>
    %cst_19 = arith.constant 0.000000e+00 : f32
    %47 = vector.broadcast %cst_19 : f32 to vector<128x256xf32>
    %48 = arith.cmpf ogt, %46, %47 : vector<128x256xf32>
    %cst_20 = arith.constant 0.000000e+00 : f32
    %49 = vector.broadcast %cst_20 : f32 to vector<128x256xf32>
    %50 = arith.select %48, %44, %49 : vector<128x256xi1>, vector<128x256xf32>
    %c0_21 = arith.constant 0 : index
    %c0_22 = arith.constant 0 : index
    %51 = vector.load %arg4[%c0_21, %c0_22] : memref<128x128xf32, #tpu.memory_space<vmem>>, vector<128x128xf32>
    %c0_23 = arith.constant 0 : index
    %c0_24 = arith.constant 0 : index
    %52 = vector.load %arg5[%c0_23, %c0_24] : memref<128x1xf32, #tpu.memory_space<vmem>>, vector<128x1xf32>
    %cst_25 = arith.constant dense<0.000000e+00> : vector<128x256xf32>
    %53 = tpu.matmul %51, %50, %cst_25 {dimension_numbers = #tpu.dot_dimension_numbers<[1], [0], [0], [1], [0, 0, 1, 1], [], []>} : vector<128x128xf32>, vector<128x256xf32>, vector<128x256xf32> -> vector<128x256xf32>
    %54 = vector.broadcast %52 : vector<128x1xf32> to vector<128x256xf32>
    %55 = arith.addf %53, %54 : vector<128x256xf32>
    %56 = arith.select %38, %55, %53 : vector<128x256xi1>, vector<128x256xf32>
    %c128_i32_26 = arith.constant 128 : i32
    %57 = tpu.dynamic_rotate %56 by %c128_i32_26 dim 1 : vector<128x256xf32>, i32 -> vector<128x256xf32>
    %58 = arith.select %38, %56, %57 : vector<128x256xi1>, vector<128x256xf32>
    %cst_27 = arith.constant 0.000000e+00 : f32
    %59 = vector.broadcast %cst_27 : f32 to vector<128x256xf32>
    %60 = arith.cmpf ogt, %58, %59 : vector<128x256xf32>
    %cst_28 = arith.constant 0.000000e+00 : f32
    %61 = vector.broadcast %cst_28 : f32 to vector<128x256xf32>
    %62 = arith.select %60, %56, %61 : vector<128x256xi1>, vector<128x256xf32>
    %c0_29 = arith.constant 0 : index
    %c0_30 = arith.constant 0 : index
    %63 = vector.load %arg6[%c0_29, %c0_30] : memref<128x128xf32, #tpu.memory_space<vmem>>, vector<128x128xf32>
    %c0_31 = arith.constant 0 : index
    %c0_32 = arith.constant 0 : index
    %64 = vector.load %arg7[%c0_31, %c0_32] : memref<128x1xf32, #tpu.memory_space<vmem>>, vector<128x1xf32>
    %cst_33 = arith.constant dense<0.000000e+00> : vector<128x256xf32>
    %65 = tpu.matmul %63, %62, %cst_33 {dimension_numbers = #tpu.dot_dimension_numbers<[1], [0], [0], [1], [0, 0, 1, 1], [], []>} : vector<128x128xf32>, vector<128x256xf32>, vector<128x256xf32> -> vector<128x256xf32>
    %66 = vector.broadcast %64 : vector<128x1xf32> to vector<128x256xf32>
    %67 = arith.addf %65, %66 : vector<128x256xf32>
    %68 = arith.select %38, %67, %65 : vector<128x256xi1>, vector<128x256xf32>
    %c128_i32_34 = arith.constant 128 : i32
    %69 = tpu.dynamic_rotate %68 by %c128_i32_34 dim 1 : vector<128x256xf32>, i32 -> vector<128x256xf32>
    %70 = arith.select %38, %68, %69 : vector<128x256xi1>, vector<128x256xf32>
    %cst_35 = arith.constant 0.000000e+00 : f32
    %71 = vector.broadcast %cst_35 : f32 to vector<128x256xf32>
    %72 = arith.cmpf ogt, %70, %71 : vector<128x256xf32>
    %cst_36 = arith.constant 0.000000e+00 : f32
    %73 = vector.broadcast %cst_36 : f32 to vector<128x256xf32>
    %74 = arith.select %72, %68, %73 : vector<128x256xi1>, vector<128x256xf32>
    %c0_37 = arith.constant 0 : index
    %c0_38 = arith.constant 0 : index
    %75 = vector.load %arg8[%c0_37, %c0_38] : memref<2x128xf32, #tpu.memory_space<vmem>>, vector<2x128xf32>
    %cst_39 = arith.constant dense<0.000000e+00> : vector<2x256xf32>
    %76 = tpu.matmul %75, %74, %cst_39 {dimension_numbers = #tpu.dot_dimension_numbers<[1], [0], [0], [1], [0, 0, 1, 1], [], []>} : vector<2x128xf32>, vector<128x256xf32>, vector<2x256xf32> -> vector<2x256xf32>
    %77 = vector.extract_strided_slice %76 {offsets = [0, 0], sizes = [2, 128], strides = [1, 1]} : vector<2x256xf32> to vector<2x128xf32>
    %c0_40 = arith.constant 0 : index
    %c0_41 = arith.constant 0 : index
    %78 = vector.load %arg9[%c0_40, %c0_41] : memref<2x1xf32, #tpu.memory_space<vmem>>, vector<2x1xf32>
    %79 = vector.broadcast %78 : vector<2x1xf32> to vector<2x128xf32>
    %80 = arith.addf %77, %79 : vector<2x128xf32>
    %cst_42 = arith.constant 1.000000e+01 : f32
    %81 = vector.broadcast %cst_42 : f32 to vector<2x128xf32>
    %82 = arith.mulf %80, %81 : vector<2x128xf32>
    %83 = vector.extract_strided_slice %76 {offsets = [0, 128], sizes = [2, 128], strides = [1, 1]} : vector<2x256xf32> to vector<2x128xf32>
    %cst_43 = arith.constant 1.000000e+01 : f32
    %84 = vector.broadcast %cst_43 : f32 to vector<2x128xf32>
    %85 = arith.mulf %83, %84 : vector<2x128xf32>
    %86 = tpu.concatenate %82, %85 in 0 : vector<2x128xf32>, vector<2x128xf32> -> vector<4x128xf32>
    %c0_44 = arith.constant 0 : index
    %c0_45 = arith.constant 0 : index
    %87 = vector.load %arg10[%c0_44, %c0_45] : memref<4x128xf32, #tpu.memory_space<vmem>>, vector<4x128xf32>
    tpu.vector_store %arg10[%c0_44, %c0_45], %86 {strides = array<i32>} : memref<4x128xf32, #tpu.memory_space<vmem>>, vector<4x128xf32>,
    return
  }
  func.func @transform_0(%arg0: i32) -> (i32, i32) {
    %c0_i32 = arith.constant 0 : i32
    %c0_i32_0 = arith.constant 0 : i32
    return %c0_i32, %arg0 : i32, i32
  }
  func.func @transform_1(%arg0: i32) -> (i32, i32) {
    %c0_i32 = arith.constant 0 : i32
    %c0_i32_0 = arith.constant 0 : i32
    %c0_i32_1 = arith.constant 0 : i32
    return %c0_i32, %c0_i32_0 : i32, i32
  }
  func.func @transform_2(%arg0: i32) -> (i32, i32) {
    %c0_i32 = arith.constant 0 : i32
    %c0_i32_0 = arith.constant 0 : i32
    %c0_i32_1 = arith.constant 0 : i32
    return %c0_i32, %c0_i32_0 : i32, i32
  }
  func.func @transform_3(%arg0: i32) -> (i32, i32) {
    %c0_i32 = arith.constant 0 : i32
    %c0_i32_0 = arith.constant 0 : i32
    %c0_i32_1 = arith.constant 0 : i32
    return %c0_i32, %c0_i32_0 : i32, i32
  }
  func.func @transform_4(%arg0: i32) -> (i32, i32) {
    %c0_i32 = arith.constant 0 : i32
    %c0_i32_0 = arith.constant 0 : i32
    %c0_i32_1 = arith.constant 0 : i32
    return %c0_i32, %c0_i32_0 : i32, i32
  }
  func.func @transform_5(%arg0: i32) -> (i32, i32) {
    %c0_i32 = arith.constant 0 : i32
    %c0_i32_0 = arith.constant 0 : i32
    %c0_i32_1 = arith.constant 0 : i32
    return %c0_i32, %c0_i32_0 : i32, i32
  }
  func.func @transform_6(%arg0: i32) -> (i32, i32) {
    %c0_i32 = arith.constant 0 : i32
    %c0_i32_0 = arith.constant 0 : i32
    %c0_i32_1 = arith.constant 0 : i32
    return %c0_i32, %c0_i32_0 : i32, i32
  }
  func.func @transform_7(%arg0: i32) -> (i32, i32) {
    %c0_i32 = arith.constant 0 : i32
    %c0_i32_0 = arith.constant 0 : i32
    %c0_i32_1 = arith.constant 0 : i32
    return %c0_i32, %c0_i32_0 : i32, i32
  }
  func.func @transform_8(%arg0: i32) -> (i32, i32) {
    %c0_i32 = arith.constant 0 : i32
    %c0_i32_0 = arith.constant 0 : i32
    %c0_i32_1 = arith.constant 0 : i32
    return %c0_i32, %c0_i32_0 : i32, i32
  }
  func.func @transform_9(%arg0: i32) -> (i32, i32) {
    %c0_i32 = arith.constant 0 : i32
    %c0_i32_0 = arith.constant 0 : i32
    return %c0_i32, %arg0 : i32, i32
  }
}

</mosaic_0001>

<bundles_post_ra>
// kernel: tpu_custom_call.1
= control target key start
LH: loop header
LB: loop body
LE: loop exit
PB: predicated region body
PF: predicated region fallthrough
CT: control target
= control target key end

     0   :  { %v2123_v9 = vmov 0   ;;  %v2124_v14 = vmov 0.0   ;;  %v2125_v19 = vmov 683565275   ;;  %v2126_v21 = vmov 2475754826   ;;  %s2698_s0 = inlined_call_operand.vmem [shape: f32[1,128], index: 0, kind: input, shape index: {}]   ;;  %s2699_s1 = inlined_call_operand.vmem [shape: f32[128,8], index: 1, kind: input, shape index: {}]   ;;  %s2700_s2 = inlined_call_operand.vmem [shape: f32[128,1], index: 2, kind: input, shape index: {}]   ;;  %s2701_s3 = inlined_call_operand.vmem [shape: f32[128,128], index: 3, kind: input, shape index: {}]   ;;  %s2702_s4 = inlined_call_operand.vmem [shape: f32[128,1], index: 4, kind: input, shape index: {}]   ;;  %s2703_s5 = inlined_call_operand.vmem [shape: f32[128,128], index: 5, kind: input, shape index: {}]   ;;  %s2704_s6 = inlined_call_operand.vmem [shape: f32[128,1], index: 6, kind: input, shape index: {}]   ;;  %s2705_s7 = inlined_call_operand.vmem [shape: f32[2,128], index: 7, kind: input, shape index: {}]   ;;  %s2706_s8 = inlined_call_operand.vmem [shape: f32[2,1], index: 8, kind: input, shape index: {}]   ;;  %s2707_s9 = inlined_call_operand.hbm [shape: f32[4,128], index: 9, kind: output, shape index: {}]  }
   0x1   :  { %v2185_v0 = vld [vmem:[%s2698_s0] sm:$0x1]  ;;  %v384_v7 = vld [vmem:[%s2700_s2 + $0x10] sm:$0xff]  ;;  %2093 = vset.pattern.permute.xlu0 %v2123_v9  ;;  %2094 = vset.pattern.permute.xlu1 %v2123_v9  ;;  %v383_v11 = vld [vmem:[%s2700_s2 + $0x8] sm:$0xff]  ;;  %v2127_v23 = vmov 2131351028  }
   0x2   :  { %v2188_v1 = vmul.f32 3.14, %v2185_v0  ;;  %v382_v6 = vld [vmem:[%s2700_s2] sm:$0xff]  ;;  %620 = vperm.xlu1 %2094, %v384_v7   ;;  %v385_v12 = vld [vmem:[%s2700_s2 + $0x18] sm:$0xff]  ;;  %511 = vmatprep.mubr.f32.mxu0 %v2124_v14  ;;  %v387_v26 = vld [vmem:[%s2700_s2 + $0x28] sm:$0xff] }
   0x3   :  { %610 = vperm.xlu0 %2093, %v382_v6   ;;  %559 = vmatprep.mubr.f32.mxu1 %v2124_v14  ;;  %v386_v25 = vld [vmem:[%s2700_s2 + $0x20] sm:$0xff]  ;;  %v2128_v27 = vmov 2102212464   ;;  %v2129_v29 = vmov 920167782   ;;  %v388_v42 = vld [vmem:[%s2700_s2 + $0x30] sm:$0xff] }
   0x4   :  { %v41_v2 = vand.u32 2139095040, %v2188_v1  ;;  %v38_v4 = vand.u32 2147483647, %v2188_v1  ;;  %v2130_v36 = vmov 1326507024   ;;  %v389_v43 = vld [vmem:[%s2700_s2 + $0x38] sm:$0xff] }
   0x5   :  { %v390_v55 = vld [vmem:[%s2700_s2 + $0x40] sm:$0xff]  ;;  %v391_v56 = vld [vmem:[%s2700_s2 + $0x48] sm:$0xff] }
   0x6   :  { %v42_v3 = vshrl.u32 %v41_v2, 23  ;;  %v45_v10 = vand.u32 8388607, %v38_v4  ;;  %625 = vperm.xlu1 %2094, %v385_v12   ;;  %v392_v2 = vld [vmem:[%s2700_s2 + $0x50] sm:$0xff] }
   0x7   :  { %615 = vperm.xlu0 %2093, %v383_v11  }
   0x8   :  { %v1814_v5 = vadd.s32 4294967169, %v42_v3  ;;  %v46_v16 = vor.u32 8388608, %v45_v10  ;;  %v393_v3 = vld [vmem:[%s2700_s2 + $0x58] sm:$0xff] }
   0xa   :  { %v48_v8 = vadd.s32 1, %v1814_v5  ;;  %v86_v38 = vshll.u32 %v46_v16, 8  ;;  %635 = vperm.xlu1 %2094, %v387_v26  }
   0xb   :  { %630 = vperm.xlu0 %2093, %v386_v25  }
   0xc   :  { %vm49_vm0 = vcmp.gt.s32.totalorder %v48_v8, 0 }
   0xd   :  { %v50_v13 = vsel %vm49_vm0, %v48_v8, 0 }
   0xe   :  { %v52_v15 = vand.u32 31, %v50_v13  ;;  %v51_v17 = vshrl.u32 %v50_v13, 5  ;;  %645 = vperm.xlu1 %2094, %v389_v43  }
   0xf   :  { %640 = vperm.xlu0 %2093, %v388_v42  }
  0x10   :  { %v53_v18 = vsub.s32 32, %v52_v15  ;;  %v55_v20 = vshll.u32 %v2125_v19, %v52_v15  ;;  %v58_v22 = vshll.u32 %v2126_v21, %v52_v15  ;;  %v61_v24 = vshll.u32 %v2127_v23, %v52_v15 }
  0x11   :  { %v64_v28 = vshll.u32 %v2128_v27, %v52_v15  ;;  %v67_v30 = vshll.u32 %v2129_v29, %v52_v15  ;;  %vm70_vm1 = vcmp.lt.s32.totalorder %v51_v17, 1  ;;  %vm73_vm2 = vcmp.lt.s32.totalorder %v51_v17, 4 }
  0x12   :  { %v54_v31 = vshrl.u32 %v2125_v19, %v53_v18  ;;  %v56_v32 = vshrl.u32 %v2126_v21, %v53_v18  ;;  %v59_v33 = vshrl.u32 %v2127_v23, %v53_v18  ;;  %v62_v34 = vshrl.u32 %v2128_v27, %v53_v18  ;;  %655 = vperm.xlu1 %2094, %v391_v56  }
  0x13   :  { %v65_v35 = vshrl.u32 %v2129_v29, %v53_v18  ;;  %v68_v37 = vshrl.u32 %v2130_v36, %v53_v18  ;;  %vm71_vm3 = vcmp.lt.s32.totalorder %v51_v17, 2  ;;  %vm72_vm4 = vcmp.lt.s32.totalorder %v51_v17, 3  ;;  %650 = vperm.xlu0 %2093, %v390_v55  }
  0x14   :  { %v57_v39 = vor.u32 %v56_v32, %v55_v20  ;;  %v60_v40 = vor.u32 %v59_v33, %v58_v22  ;;  %v63_v41 = vor.u32 %v62_v34, %v61_v24 }
  0x15   :  { %v66_v44 = vor.u32 %v65_v35, %v64_v28  ;;  %v69_v45 = vor.u32 %v68_v37, %v67_v30 }
  0x16   :  { %v74_v46 = vsel %vm70_vm1, %v54_v31, %v57_v39  ;;  %v75_v47 = vsel %vm73_vm2, %v63_v41, 2102212464  ;;  %v78_v48 = vsel %vm70_vm1, %v57_v39, %v60_v40  ;;  %v82_v49 = vsel %vm70_vm1, %v60_v40, %v63_v41 }
  0x17   :  { %v76_v50 = vsel %vm72_vm4, %v60_v40, %v75_v47  ;;  %v79_v51 = vsel %vm73_vm2, %v66_v44, 920167782  ;;  %v83_v52 = vsel %vm73_vm2, %v69_v45, 1326507024 }
  0x18   :  { %v80_v53 = vsel %vm72_vm4, %v63_v41, %v79_v51  ;;  %v84_v54 = vsel %vm72_vm4, %v66_v44, %v83_v52  ;;  %v77_v57 = vsel %vm71_vm3, %v74_v46, %v76_v50 }
  0x19   :  { %v81_v58 = vsel %vm71_vm3, %v78_v48, %v80_v53  ;;  %v85_v59 = vsel %vm71_vm3, %v82_v49, %v84_v54 }
  0x1a   :  { %v2232_v60 = vmul.u32.u64.low %v86_v38, %v85_v59  ;;  %v2233_v61 = vmul.u32.u64.high %v86_v38, %v85_v59, %v2232_v60  ;;  %v2235_v62 = vmul.u32.u64.low %v86_v38, %v81_v58  ;;  %v2236_v63 = vmul.u32.u64.high %v86_v38, %v81_v58, %v2235_v62 }
  0x1b   :  { %14 = vsyncpa [#allocation3], 0  ;;  %v93_v5 = vmul.u32 %v86_v38, %v77_v57  ;;  %660 = vperm.xlu0 %2093, %v392_v2   ;;  %665 = vperm.xlu1 %2094, %v393_v3   ;;  %v394_v8 = vld [vmem:[%s2700_s2 + $0x60] sm:$0xff]  ;;  %v395_v9 = vld [vmem:[%s2700_s2 + $0x68] sm:$0xff]  ;;  %v250_v48 = vlaneseq  ;;  %vm40_vm7 = vcmp.lt.s32.totalorder %v2188_v1, 0  ;;  %vm291_vm9 = vcmask 1040384  }
  0x1c   :  { %vm95_vm5 = vc.u32 %v2233_v61, %v2235_v62  ;;  %v96_v6 = vadd.s32 1, %v2236_v63  ;;  %v396_v12 = vld [vmem:[%s2700_s2 + $0x70] sm:$0xff]  ;;  %v397_v13 = vld [vmem:[%s2700_s2 + $0x78] sm:$0xff]  ;;  %v864_v17 = vld [vmem:[%s2702_s4] sm:$0xff]  ;;  %v94_v28 = vadd.s32 %v2235_v62, %v2233_v61  ;;  %vm39_vm8 = vcmp.le.f32.partialorder %v38_v4, 0.7853982 }
  0x1d   :  { %v865_v18 = vld [vmem:[%s2702_s4 + $0x8] sm:$0xff]  ;;  %v866_v21 = vld [vmem:[%s2702_s4 + $0x10] sm:$0xff]  ;;  %v867_v22 = vld [vmem:[%s2702_s4 + $0x18] sm:$0xff]  ;;  %v251_v54 = vshrl.u32 %v250_v48, 7  ;;  %v34_v4 = vmul.f32 %v2185_v0, %v2185_v0  ;;  %v305_v61 = vmul.f32 2.0, %v2185_v0  ;;  %vm130_vm10 = vweird.f32 %v2188_v1  ;;  %s2131_s27 = smov [#allocation2]  }
  0x1e   :  { %v97_v7 = vsel %vm95_vm5, %v96_v6, %v2236_v63  ;;  %v868_v25 = vld [vmem:[%s2702_s4 + $0x20] sm:$0xff]  ;;  %v869_v26 = vld [vmem:[%s2702_s4 + $0x28] sm:$0xff]  ;;  %v870_v30 = vld [vmem:[%s2702_s4 + $0x30] sm:$0xff]  ;;  %vm293_vm11 = vcmask 1041408   ;;  %vm295_vm2 = vcmask 1042432   ;;  %vm297_vm3 = vcmask 1043456  }
  0x1f   :  { %v98_v10 = vadd.s32 %v97_v7, %v93_v5  ;;  %670 = vperm.xlu0 %2093, %v394_v8   ;;  %675 = vperm.xlu1 %2094, %v395_v9   ;;  %v871_v31 = vld [vmem:[%s2702_s4 + $0x38] sm:$0xff]  ;;  %v872_v37 = vld [vmem:[%s2702_s4 + $0x40] sm:$0xff]  ;;  %v873_v38 = vld [vmem:[%s2702_s4 + $0x48] sm:$0xff]  ;;  %v2314_v60 = vsub.s32 0, %v251_v54  ;;  %v35_v2 = vmul.f32 %v34_v4, %v2185_v0  ;;  %v306_v6 = vmul.f32 3.0, %v34_v4  ;;  %s1806_s28 = sshll.u32 %s2131_s27, 4  ;;  %s1807_s28 = int_to_ptr.vmem [resolvable:$true] %s1806_s28 }
  0x20   :  { %v874_v43 = vld [vmem:[%s2702_s4 + $0x50] sm:$0xff]  ;;  %v875_v44 = vld [vmem:[%s2702_s4 + $0x58] sm:$0xff]  ;;  %v876_v49 = vld [vmem:[%s2702_s4 + $0x60] sm:$0xff]  ;;  %vm299_vm4 = vcmask 1044480   ;;  %vm301_vm5 = vcmask 1045504   ;;  %p2104_p1 = scmp.lt.s32.totalorder %s1807_s28, %s1807_s28 }
  0x21   :  { %v99_v11 = vadd.s32 536870912, %v98_v10  ;;  %v877_v50 = vld [vmem:[%s2702_s4 + $0x68] sm:$0xff]  ;;  %v878_v57 = vld [vmem:[%s2702_s4 + $0x70] sm:$0xff]  ;;  %v879_v58 = vld [vmem:[%s2702_s4 + $0x78] sm:$0xff]  ;;  %v253_v7 = vrot.slane %v34_v4, %v2314_v60  ;;  %v316_v8 = vrot.slane %v305_v61, %v2314_v60 }
  0x22   :  { %v1297_v62 = vld [vmem:[%s2704_s6] sm:$0xff]  ;;  %v1298_v63 = vld [vmem:[%s2704_s6 + $0x8] sm:$0xff]  ;;  %v1299_v9 = vld [vmem:[%s2704_s6 + $0x10] sm:$0xff] }
  0x23   :  { %v100_v15 = vshrl.u32 %v99_v11, 30  ;;  %680 = vperm.xlu0 %2093, %v396_v12   ;;  %685 = vperm.xlu1 %2094, %v397_v13   ;;  %v36_v11 = vmul.f32 %v34_v4, %v34_v4  ;;  %v307_v12 = vmul.f32 4.0, %v35_v2  ;;  %v259_v13 = vrot.slane %v35_v2, %v2314_v60  ;;  %v1306_v48 = vld [vmem:[%s2704_s6 + $0x48] sm:$0xff]  ;;  %v1307_v4 = vld [vmem:[%s2704_s6 + $0x50] sm:$0xff] }
  0x25   :  { %v101_v16 = vshll.u32 %v100_v15, 30  ;;  %v124_v46 = vsub.s32 4, %v100_v15 }
  0x27   :  { %v102_v19 = vsub.s32 %v98_v10, %v101_v16  ;;  %1043 = vperm.xlu0 %2093, %v864_v17   ;;  %1048 = vperm.xlu1 %2094, %v865_v18   ;;  %v125_v52 = vsel %vm40_vm7, %v124_v46, %v100_v15  ;;  %v1300_v10 = vld [vmem:[%s2704_s6 + $0x18] sm:$0xff]  ;;  %v322_v16 = vrot.slane %v306_v6, %v2314_v60  ;;  %v374_v6 = vld [vmem:[%s2699_s1 + $0x40] sm:$0xff] }
  0x28   :  { %v127_v56 = vsel %vm39_vm8, 0, %v125_v52  ;;  %v292_v17 = vsel %vm291_vm9, %v2185_v0, %v253_v7  ;;  %v265_v0 = vrot.slane %v36_v11, %v2314_v60  ;;  %v1310_v7 = vld [vmem:[%s2704_s6 + $0x68] sm:$0xff]  ;;  %v1312_v11 = vld [vmem:[%s2704_s6 + $0x78] sm:$0xff] }
  0x29   :  { %v104_v20 = vsub.s32 0, %v102_v19  ;;  %v131_v59 = vadd.s32 3, %v127_v56  ;;  %v235_v5 = vand.u32 3, %v127_v56 }
  0x2b   :  { %v1815_v23 = vmin.u32 %v104_v20, %v102_v19  ;;  %1053 = vperm.xlu0 %2093, %v866_v21   ;;  %1058 = vperm.xlu1 %2094, %v867_v22   ;;  %v132_v3 = vand.u32 3, %v131_v59  ;;  %vm240_vm13 = vcmp.eq.s32.totalorder %v235_v5, 2  ;;  %vm237_vm15 = vcmp.eq.s32.totalorder %v235_v5, 0  ;;  %v1301_v21 = vld [vmem:[%s2704_s6 + $0x20] sm:$0xff]  ;;  %v1302_v22 = vld [vmem:[%s2704_s6 + $0x28] sm:$0xff]  ;;  %v1308_v59 = vld [vmem:[%s2704_s6 + $0x58] sm:$0xff] }
  0x2c   :  { %v354_v20 = vsel %vm291_vm9, 1.0, %v316_v8  ;;  %vm236_vm1 = vcmp.lt.s32.totalorder %v235_v5, 2  ;;  %v366_v5 = vld [vmem:[%s2699_s1] sm:$0xff]  ;;  %v367_v8 = vld [vmem:[%s2699_s1 + $0x8] sm:$0xff] }
  0x2d   :  { %v106_v24 = vclz %v1815_v23  ;;  %vm137_vm12 = vcmp.eq.s32.totalorder %v132_v3, 2  ;;  %vm134_vm14 = vcmp.eq.s32.totalorder %v132_v3, 0  ;;  %vm133_vm0 = vcmp.lt.s32.totalorder %v132_v3, 2 }
  0x2f   :  { %v1816_v27 = vadd.s32 4294967294, %v106_v24  ;;  %1063 = vperm.xlu0 %2093, %v868_v25   ;;  %1068 = vperm.xlu1 %2094, %v869_v26   ;;  %v294_v26 = vsel %vm293_vm11, %v292_v17, %v259_v13  ;;  %v376_v13 = vld [vmem:[%s2699_s1 + $0x50] sm:$0xff]  ;;  %v377_v17 = vld [vmem:[%s2699_s1 + $0x58] sm:$0xff] }
  0x31   :  { %vm1817_vm6 = vcmp.lt.s32.totalorder %v1816_v27, 0 }
  0x32   :  { %v109_v29 = vsel %vm1817_vm6, 0, %v1816_v27  ;;  %vm303_vm6 = vcmask 1046528  }
  0x33   :  { %v110_v32 = vsub.s32 32, %v109_v29  ;;  %v111_v33 = vshll.u32 %v102_v19, %v109_v29  ;;  %v114_v34 = vsub.s32 4294967266, %v109_v29  ;;  %1073 = vperm.xlu0 %2093, %v870_v30   ;;  %1078 = vperm.xlu1 %2094, %v871_v31   ;;  %v328_v29 = vrot.slane %v307_v12, %v2314_v60  ;;  %v368_v12 = vld [vmem:[%s2699_s1 + $0x10] sm:$0xff] }
  0x35   :  { %v112_v35 = vshrl.u32 %v94_v28, %v110_v32  ;;  %v115_v36 = vadd.s32 127, %v114_v34  ;;  %v355_v32 = vsel %vm293_vm11, %v354_v20, %v322_v16  ;;  %v1304_v34 = vld [vmem:[%s2704_s6 + $0x38] sm:$0xff]  ;;  %v371_v20 = vld [vmem:[%s2699_s1 + $0x28] sm:$0xff] }
  0x36   :  { %v369_v16 = vld [vmem:[%s2699_s1 + $0x18] sm:$0xff] }
  0x37   :  { %v113_v39 = vor.u32 %v112_v35, %v111_v33  ;;  %v116_v40 = vshll.u32 %v115_v36, 23  ;;  %1083 = vperm.xlu0 %2093, %v872_v37   ;;  %1088 = vperm.xlu1 %2094, %v873_v38   ;;  %v1303_v33 = vld [vmem:[%s2704_s6 + $0x30] sm:$0xff]  ;;  %v296_v37 = vsel %vm295_vm2, %v294_v26, %v265_v0  ;;  %v373_v0 = vld [vmem:[%s2699_s1 + $0x38] sm:$0xff] }
  0x39   :  { %v117_v41 = vor.u32 4788187, %v116_v40  ;;  %v120_v42 = vcvt.s32.f32 %v113_v39 }
  0x3b   :  { %v118_v45 = vand.u32 2147483647, %v117_v41  ;;  %1093 = vperm.xlu0 %2093, %v874_v43   ;;  %1098 = vperm.xlu1 %2094, %v875_v44  }
  0x3d   :  { %v121_v47 = vmul.f32 %v120_v42, %v118_v45  ;;  %v356_v42 = vsel %vm295_vm2, %v355_v32, %v328_v29 }
  0x3f   :  { %v122_v51 = vxor.u32 2147483648, %v121_v47  ;;  %1103 = vperm.xlu0 %2093, %v876_v49   ;;  %1108 = vperm.xlu1 %2094, %v877_v50  }
  0x41   :  { %v123_v53 = vsel %vm40_vm7, %v122_v51, %v121_v47  ;;  %v1305_v47 = vld [vmem:[%s2704_s6 + $0x40] sm:$0xff]  ;;  %vm398_vm7 = vcmask 64512  }
  0x42   :  { %v126_v55 = vsel %vm39_vm8, %v2188_v1, %v123_v53 }
  0x43   :  { %2095 = vcosq.f32 %v126_v55  ;;  %1113 = vperm.xlu0 %2093, %v878_v57   ;;  %1118 = vperm.xlu1 %2094, %v879_v58  }
  0x44   :  { %2097 = vsinq.f32 %v126_v55 }
  0x47   :  { %1476 = vperm.xlu0 %2093, %v1297_v62   ;;  %1481 = vperm.xlu1 %2094, %v1298_v63  }
  0x4b   :  { %1486 = vperm.xlu0 %2093, %v1299_v9   ;;  %1491 = vperm.xlu1 %2094, %v1300_v10   ;;  %v375_v9 = vld [vmem:[%s2699_s1 + $0x48] sm:$0xff]  ;;  %v1311_v10 = vld [vmem:[%s2704_s6 + $0x70] sm:$0xff] }
  0x4d   :  { %v2096_v15 = vpop.eup %2095 }
  0x4e   :  { %v2098_v18 = vpop.eup %2097  ;;  %v138_v19 = vxor.u32 2147483648, %v2096_v15 }
  0x4f   :  { %v135_v23 = vxor.u32 2147483648, %v2098_v18  ;;  %1496 = vperm.xlu0 %2093, %v1301_v21   ;;  %1501 = vperm.xlu1 %2094, %v1302_v22   ;;  %v379_v21 = vld [vmem:[%s2699_s1 + $0x68] sm:$0xff]  ;;  %v372_v22 = vld [vmem:[%s2699_s1 + $0x30] sm:$0xff] }
  0x50   :  { %v139_v24 = vsel %vm137_vm12, %v138_v19, %v2098_v18  ;;  %v242_v25 = vsel %vm240_vm13, %v138_v19, %v2098_v18  ;;  %v370_v18 = vld [vmem:[%s2699_s1 + $0x20] sm:$0xff] }
  0x51   :  { %v136_v27 = vsel %vm134_vm14, %v2096_v15, %v135_v23  ;;  %v239_v28 = vsel %vm237_vm15, %v2096_v15, %v135_v23  ;;  %v1786_v15 = vld [vmem:[%s2706_s8] sm:$0x3]  ;;  %v380_v23 = vld [vmem:[%s2699_s1 + $0x70] sm:$0xff]  ;;  %s2099_s8 = scalar_lea.vmem %s1807_s28, 64 }
  0x52   :  { %v140_v30 = vsel %vm133_vm0, %v136_v27, %v139_v24  ;;  %v243_v31 = vsel %vm236_vm1, %v239_v28, %v242_v25  ;;  %v378_v19 = vld [vmem:[%s2699_s1 + $0x60] sm:$0xff]  ;;  %v381_v24 = vld [vmem:[%s2699_s1 + $0x78] sm:$0xff]  ;;  %p2100_p0 = scmp.ne.s32.totalorder %s1807_s28, %s2099_s8  ;;  %p2105_p2 = scmp.lt.s32.totalorder %s2099_s8, %s2099_s8 }
  0x53   :  { %v141_v35 = vsel %vm130_vm10, nan, %v140_v30  ;;  %v244_v36 = vsel %vm130_vm10, nan, %v243_v31  ;;  %1506 = vperm.xlu0 %2093, %v1303_v33   ;;  %1511 = vperm.xlu1 %2094, %v1304_v34  }
  0x54   :  { %v245_v38 = vmul.f32 2.0, %v141_v35  ;;  %v308_v39 = vmul.f32 3.14, %v244_v36  ;;  %v309_v40 = vmul.f32 -3.14, %v141_v35  ;;  %v271_v41 = vrot.slane %v141_v35, %v2314_v60  ;;  %p2106_p3 = por %p2105_p2, %p2104_p1 }
  0x55   :  { %v277_v43 = vrot.slane %v244_v36, %v2314_v60 }
  0x56   :  { %v246_v44 = vmul.f32 %v245_v38, %v244_v36  ;;  %v247_v45 = vmul.f32 %v245_v38, %v141_v35  ;;  %v334_v1 = vrot.slane %v308_v39, %v2314_v60  ;;  %v340_v46 = vrot.slane %v309_v40, %v2314_v60  ;;  %p2107_p4 = pnand %p2106_p3, %p2100_p0 }
  0x57   :  { %v298_v49 = vsel %vm297_vm3, %v296_v37, %v271_v41  ;;  %1516 = vperm.xlu0 %2093, %v1305_v47   ;;  %1521 = vperm.xlu1 %2094, %v1306_v48  }
  0x58   :  { %v248_v50 = vsub.f32 1.0, %v247_v45  ;;  %v311_v51 = vmul.f32 -6.28, %v246_v44  ;;  %v357_v52 = vsel %vm297_vm3, %v356_v42, %v334_v1  ;;  %v283_v53 = vrot.slane %v246_v44, %v2314_v60 }
  0x59   :  { %v358_v54 = vsel %vm299_vm4, %v357_v52, %v340_v46  ;;  %v300_v55 = vsel %vm299_vm4, %v298_v49, %v277_v43 }
  0x5a   :  { %v310_v56 = vmul.f32 6.28, %v248_v50  ;;  %v289_v57 = vrot.slane %v248_v50, %v2314_v60  ;;  %v302_v58 = vsel %vm301_vm5, %v300_v55, %v283_v53  ;;  %v352_v61 = vrot.slane %v311_v51, %v2314_v60  ;;  %v859_v55 = vld [vmem:[%s2701_s3 + $0x58] sm:$0xff] }
  0x5b   :  { %1526 = vperm.xlu0 %2093, %v1307_v4   ;;  %1531 = vperm.xlu1 %2094, %v1308_v59  }
  0x5c   :  { %v346_v62 = vrot.slane %v310_v56, %v2314_v60  ;;  %v304_v63 = vsel %vm303_vm6, %v302_v58, %v289_v57  ;;  %v1309_v60 = vld [vmem:[%s2704_s6 + $0x60] sm:$0xff] }
  0x5e   :  { %v359_v2 = vsel %vm301_vm5, %v358_v54, %v346_v62 }
  0x5f   :  { %v360_v3 = vsel %vm303_vm6, %v359_v2, %v352_v61  ;;  %1536 = vperm.xlu0 %2093, %v1309_v60   ;;  %1541 = vperm.xlu1 %2094, %v1310_v7  }
  0x60   :  { %447 = vmatprep.subr.mxu0 %v360_v3  ;;  %2078 = vmatprep.subr.mxu1 %v360_v3 }
  0x61   :  { %448 = vmatpush1.msra.mxu0 %v304_v63  ;;  %2079 = vmatpush1.msra.mxu1 %v304_v63 }
  0x62   :  { %1822 = vmatmul.mubr.msk.f32.vlgmr.msra.gmra.mrb[0].mxu0 %vm398_vm7, %v366_v5  ;;  %1830 = vmatmul.mubr.msk.f32.vlgmr.msra.gmra.mrb[0].mxu1 %vm398_vm7, %v374_v6 }
  0x63   :  { %517 = vmatprep.mubr.f32.mxu0 %v2124_v14  ;;  %565 = vmatprep.mubr.f32.mxu1 %v2124_v14 }
  0x64   :  { %1546 = vperm.xlu0 %2093, %v1311_v10   ;;  %1551 = vperm.xlu1 %2094, %v1312_v11  }
  0x66   :  { %1823 = vmatmul.mubr.msk.f32.gmra.mrb[2].mxu0 %vm398_vm7, %v367_v8  ;;  %1831 = vmatmul.mubr.msk.f32.gmra.mrb[2].mxu1 %vm398_vm7, %v375_v9 }
  0x67   :  { %523 = vmatprep.mubr.f32.mxu0 %v2124_v14  ;;  %571 = vmatprep.mubr.f32.mxu1 %v2124_v14 }
  0x68   :  { %1789 = vperm.xlu0 %2093, %v1786_v15  }
  0x6a   :  { %1824 = vmatmul.mubr.msk.f32.gmra.mrb[4].mxu0 %vm398_vm7, %v368_v12  ;;  %1832 = vmatmul.mubr.msk.f32.gmra.mrb[4].mxu1 %vm398_vm7, %v376_v13 }
  0x6b   :  { %529 = vmatprep.mubr.f32.mxu0 %v2124_v14  ;;  %577 = vmatprep.mubr.f32.mxu1 %v2124_v14 }
  0x6e   :  { %1825 = vmatmul.mubr.msk.f32.gmra.mrb[6].mxu0 %vm398_vm7, %v369_v16  ;;  %1833 = vmatmul.mubr.msk.f32.gmra.mrb[6].mxu1 %vm398_vm7, %v377_v17 }
  0x6f   :  { %535 = vmatprep.mubr.f32.mxu0 %v2124_v14  ;;  %583 = vmatprep.mubr.f32.mxu1 %v2124_v14 }
  0x72   :  { %1826 = vmatmul.mubr.msk.f32.gmra.mrb[8].mxu0 %vm398_vm7, %v370_v18  ;;  %1834 = vmatmul.mubr.msk.f32.gmra.mrb[8].mxu1 %vm398_vm7, %v378_v19 }
  0x73   :  { %541 = vmatprep.mubr.f32.mxu0 %v2124_v14  ;;  %589 = vmatprep.mubr.f32.mxu1 %v2124_v14 }
  0x76   :  { %1827 = vmatmul.mubr.msk.f32.gmra.mrb[10].mxu0 %vm398_vm7, %v371_v20  ;;  %1835 = vmatmul.mubr.msk.f32.gmra.mrb[10].mxu1 %vm398_vm7, %v379_v21 }
  0x77   :  { %547 = vmatprep.mubr.f32.mxu0 %v2124_v14  ;;  %595 = vmatprep.mubr.f32.mxu1 %v2124_v14 }
  0x7a   :  { %1828 = vmatmul.mubr.msk.f32.gmra.mrb[12].mxu0 %vm398_vm7, %v372_v22  ;;  %1836 = vmatmul.mubr.msk.f32.gmra.mrb[12].mxu1 %vm398_vm7, %v380_v23 }
  0x7b   :  { %553 = vmatprep.mubr.f32.mxu0 %v2124_v14  ;;  %601 = vmatprep.mubr.f32.mxu1 %v2124_v14 }
  0x7e   :  { %1829 = vmatmul.mubr.msk.f32.gmra.mrb[14].mxu0 %vm398_vm7, %v373_v0  ;;  %1837 = vmatmul.mubr.msk.f32.gmra.mrb[14].mxu1 %vm398_vm7, %v381_v24 }
  0x7f   :  { %944 = vmatprep.mubr.f32.mxu1 %v2124_v14  ;;  %1377 = vmatprep.mubr.f32.mxu0 %v2124_v14 }
  0x81   :  { %v621_v26 = vpop.permute.xlu1 %620 }
  0x82   :  { %v611_v25 = vpop.permute.xlu0 %610 }
  0x85   :  { %v626_v28 = vpop.permute.xlu1 %625 }
  0x86   :  { %v616_v27 = vpop.permute.xlu0 %615 }
  0x89   :  { %v2485_v30 = vpop.permute.xlu1 %635 }
  0x8a   :  { %v631_v29 = vpop.permute.xlu0 %630 }
  0x8d   :  { %v2489_v32 = vpop.permute.xlu1 %645 }
  0x8e   :  { %v2487_v31 = vpop.permute.xlu0 %640 }
  0x91   :  { %v656_v40 = vpop.permute.xlu1 %655 }
  0x92   :  { %v651_v33 = vpop.permute.xlu0 %650 }
  0x9a   :  { %v661_v48 = vpop.permute.xlu0 %660  ;;  %v666_v58 = vpop.permute.xlu1 %665 }
  0x9e   :  { %v671_v13 = vpop.permute.xlu0 %670  ;;  %v676_v15 = vpop.permute.xlu1 %675 }
 0x135   :  { %v513_v34 = vpop.f32.mrb[0].mxu0  ;;  %v561_v35 = vpop.f32.mrb[0].mxu1 }
 0x136   :  { %v515_v36 = vpop.f32.mrb[1].mxu0  ;;  %v2491_v37 = vpop.f32.mrb[1].mxu1  ;;  %v688_v38 = vadd.f32 %v611_v25, %v513_v34  ;;  %v2493_v39 = vadd.f32 %v651_v33, %v561_v35 }
 0x137   :  { %v681_v34 = vpop.permute.xlu0 %680  ;;  %v686_v35 = vpop.permute.xlu1 %685 }
 0x138   :  { %vm784_vm8 = vcmp.gt.f32.partialorder %v688_v38, 0.0  ;;  %vm800_vm9 = vcmp.gt.f32.partialorder %v2493_v39, 0.0 }
 0x139   :  { %v519_v41 = vpop.f32.mrb[2].mxu0  ;;  %v567_v42 = vpop.f32.mrb[2].mxu1 }
 0x13a   :  { %v690_v43 = vadd.f32 %v616_v27, %v519_v41  ;;  %v521_v44 = vpop.f32.mrb[3].mxu0  ;;  %v2495_v45 = vadd.f32 %v656_v40, %v567_v42  ;;  %v2497_v1 = vpop.f32.mrb[3].mxu1 }
 0x13b   :  { %v1934_v46 = vpack.c.bf16 %v521_v44, %v515_v36  ;;  %v1958_v47 = vpack.c.bf16 %v2497_v1, %v2491_v37  ;;  %v850_v37 = vld [vmem:[%s2701_s3 + $0x10] sm:$0xff]  ;;  %v853_v1 = vld [vmem:[%s2701_s3 + $0x28] sm:$0xff] }
 0x13c   :  { %vm786_vm10 = vcmp.gt.f32.partialorder %v690_v43, 0.0  ;;  %v1937_v49 = vpack.c.bf16 %v690_v43, %v688_v38  ;;  %vm802_vm12 = vcmp.gt.f32.partialorder %v2495_v45, 0.0  ;;  %v1961_v50 = vpack.c.bf16 %v2495_v45, %v2493_v39  ;;  %v851_v39 = vld [vmem:[%s2701_s3 + $0x18] sm:$0xff]  ;;  %v852_v45 = vld [vmem:[%s2701_s3 + $0x20] sm:$0xff] }
 0x13d   :  { %v525_v51 = vpop.f32.mrb[4].mxu0  ;;  %vm1935_vm13 = vmpackc.low %vm786_vm10, %vm784_vm8  ;;  %v573_v52 = vpop.f32.mrb[4].mxu1 }
 0x13e   :  { %v527_v53 = vpop.f32.mrb[5].mxu0  ;;  %1936 = vmatprep.subr.msk.bf16.mxu1 %vm1935_vm13, %v1934_v46  ;;  %v2505_v54 = vpop.f32.mrb[5].mxu1  ;;  %vm2507_vm14 = vmpackc.low %vm802_vm12, %vm800_vm9  ;;  %v692_v56 = vadd.f32 %v621_v26, %v525_v51  ;;  %v2511_v57 = vadd.f32 %v661_v48, %v573_v52  ;;  %v856_v52 = vld [vmem:[%s2701_s3 + $0x40] sm:$0xff] }
 0x13f   :  { %1939 = vmatpush1.bf16.msk.msra.mxu1 %vm1935_vm13, %v1937_v49 }
 0x140   :  { %vm788_vm15 = vcmp.gt.f32.partialorder %v692_v56, 0.0  ;;  %vm804_vm0 = vcmp.gt.f32.partialorder %v2511_v57, 0.0 }
 0x141   :  { %v531_v4 = vpop.f32.mrb[6].mxu0  ;;  %v579_v59 = vpop.f32.mrb[6].mxu1 }
 0x142   :  { %v694_v61 = vadd.f32 %v626_v28, %v531_v4  ;;  %v2513_v62 = vadd.f32 %v666_v58, %v579_v59  ;;  %v533_v63 = vpop.f32.mrb[7].mxu0  ;;  %v2515_v2 = vpop.f32.mrb[7].mxu1  ;;  %v862_v58 = vld [vmem:[%s2701_s3 + $0x70] sm:$0xff]  ;;  %v863_v4 = vld [vmem:[%s2701_s3 + $0x78] sm:$0xff] }
 0x143   :  { %v1940_v3 = vpack.c.bf16 %v533_v63, %v527_v53  ;;  %v1964_v5 = vpack.c.bf16 %v2515_v2, %v2505_v54  ;;  %v857_v53 = vld [vmem:[%s2701_s3 + $0x48] sm:$0xff]  ;;  %v858_v54 = vld [vmem:[%s2701_s3 + $0x50] sm:$0xff]  ;;  %v1049_v2 = vpop.permute.xlu1 %1048 }
 0x144   :  { %vm790_vm1 = vcmp.gt.f32.partialorder %v694_v61, 0.0  ;;  %v1943_v6 = vpack.c.bf16 %v694_v61, %v692_v56  ;;  %vm806_vm2 = vcmp.gt.f32.partialorder %v2513_v62, 0.0  ;;  %v1967_v60 = vpack.c.bf16 %v2513_v62, %v2511_v57  ;;  %v860_v56 = vld [vmem:[%s2701_s3 + $0x60] sm:$0xff]  ;;  %v861_v57 = vld [vmem:[%s2701_s3 + $0x68] sm:$0xff]  ;;  %v1044_v62 = vpop.permute.xlu0 %1043 }
 0x145   :  { %v537_v7 = vpop.f32.mrb[8].mxu0  ;;  %v585_v8 = vpop.f32.mrb[8].mxu1  ;;  %vm1941_vm3 = vmpackc.low %vm790_vm1, %vm788_vm15 }
 0x146   :  { %v539_v9 = vpop.f32.mrb[9].mxu0  ;;  %1942 = vmatprep.subr.msk.bf16.mxu1 %vm1941_vm3, %v1940_v3  ;;  %v587_v10 = vpop.f32.mrb[9].mxu1  ;;  %vm2523_vm4 = vmpackc.low %vm806_vm2, %vm804_vm0  ;;  %v696_v12 = vadd.f32 %v631_v29, %v537_v7  ;;  %v712_v16 = vadd.f32 %v671_v13, %v585_v8 }
 0x147   :  { %1945 = vmatpush1.bf16.msk.msra.mxu1 %vm1941_vm3, %v1943_v6 }
 0x148   :  { %vm792_vm5 = vcmp.gt.f32.partialorder %v696_v12, 0.0  ;;  %vm808_vm8 = vcmp.gt.f32.partialorder %v712_v16, 0.0 }
 0x149   :  { %v543_v17 = vpop.f32.mrb[10].mxu0  ;;  %v591_v18 = vpop.f32.mrb[10].mxu1 }
 0x14a   :  { %v698_v19 = vadd.f32 %v2485_v30, %v543_v17  ;;  %v714_v20 = vadd.f32 %v676_v15, %v591_v18  ;;  %v545_v21 = vpop.f32.mrb[11].mxu0  ;;  %v593_v22 = vpop.f32.mrb[11].mxu1 }
 0x14b   :  { %v1946_v23 = vpack.c.bf16 %v545_v21, %v539_v9  ;;  %v1970_v0 = vpack.c.bf16 %v593_v22, %v587_v10  ;;  %v1054_v10 = vpop.permute.xlu0 %1053 }
 0x14c   :  { %vm794_vm6 = vcmp.gt.f32.partialorder %v698_v19, 0.0  ;;  %v1949_v24 = vpack.c.bf16 %v698_v19, %v696_v12  ;;  %vm810_vm7 = vcmp.gt.f32.partialorder %v714_v20, 0.0  ;;  %v1973_v25 = vpack.c.bf16 %v714_v20, %v712_v16  ;;  %v1059_v12 = vpop.permute.xlu1 %1058 }
 0x14d   :  { %v549_v26 = vpop.f32.mrb[12].mxu0  ;;  %v597_v27 = vpop.f32.mrb[12].mxu1  ;;  %vm1947_vm9 = vmpackc.low %vm794_vm6, %vm792_vm5 }
 0x14e   :  { %v551_v28 = vpop.f32.mrb[13].mxu0  ;;  %1948 = vmatprep.subr.msk.bf16.mxu1 %vm1947_vm9, %v1946_v23  ;;  %v599_v29 = vpop.f32.mrb[13].mxu1  ;;  %vm2528_vm10 = vmpackc.low %vm810_vm7, %vm808_vm8  ;;  %v700_v30 = vadd.f32 %v2487_v31, %v549_v26  ;;  %v716_v36 = vadd.f32 %v681_v34, %v597_v27  ;;  %v848_v31 = vld [vmem:[%s2701_s3] sm:$0xff] }
 0x14f   :  { %1951 = vmatpush1.bf16.msk.msra.mxu1 %vm1947_vm9, %v1949_v24  ;;  %v1064_v21 = vpop.permute.xlu0 %1063 }
 0x150   :  { %vm796_vm12 = vcmp.gt.f32.partialorder %v700_v30, 0.0  ;;  %vm812_vm0 = vcmp.gt.f32.partialorder %v716_v36, 0.0  ;;  %v1069_v23 = vpop.permute.xlu1 %1068 }
 0x151   :  { %v555_v38 = vpop.f32.mrb[14].mxu0  ;;  %v603_v40 = vpop.f32.mrb[14].mxu1 }
 0x152   :  { %v702_v41 = vadd.f32 %v2489_v32, %v555_v38  ;;  %v718_v42 = vadd.f32 %v686_v35, %v603_v40  ;;  %v557_v43 = vpop.f32.mrb[15].mxu0  ;;  %v605_v44 = vpop.f32.mrb[15].mxu1  ;;  %v849_v32 = vld [vmem:[%s2701_s3 + $0x8] sm:$0xff] }
 0x153   :  { %v1952_v46 = vpack.c.bf16 %v557_v43, %v551_v28  ;;  %v1976_v48 = vpack.c.bf16 %v605_v44, %v599_v29  ;;  %v1074_v33 = vpop.permute.xlu0 %1073 }
 0x154   :  { %vm798_vm13 = vcmp.gt.f32.partialorder %v702_v41, 0.0  ;;  %v1955_v49 = vpack.c.bf16 %v702_v41, %v700_v30  ;;  %vm814_vm15 = vcmp.gt.f32.partialorder %v718_v42, 0.0  ;;  %v1979_v51 = vpack.c.bf16 %v718_v42, %v716_v36  ;;  %v1079_v34 = vpop.permute.xlu1 %1078 }
 0x155   :  { %vm1953_vm1 = vmpackc.low %vm798_vm13, %vm796_vm12 }
 0x156   :  { %1954 = vmatprep.subr.msk.bf16.mxu1 %vm1953_vm1, %v1952_v46  ;;  %vm1977_vm2 = vmpackc.low %vm814_vm15, %vm812_vm0 }
 0x157   :  { %1957 = vmatpush1.bf16.msk.msra.mxu1 %vm1953_vm1, %v1955_v49  ;;  %v1084_v44 = vpop.permute.xlu0 %1083 }
 0x158   :  { %1960 = vmatprep.subr.msk.bf16.mxu1 %vm2507_vm14, %v1958_v47  ;;  %v854_v47 = vld [vmem:[%s2701_s3 + $0x30] sm:$0xff] }
 0x15b   :  { %1963 = vmatpush1.bf16.msk.msra.mxu1 %vm2507_vm14, %v1961_v50  ;;  %v855_v50 = vld [vmem:[%s2701_s3 + $0x38] sm:$0xff] }
 0x15c   :  { %1966 = vmatprep.subr.msk.bf16.mxu1 %vm2523_vm4, %v1964_v5 }
 0x15f   :  { %1969 = vmatpush1.bf16.msk.msra.mxu1 %vm2523_vm4, %v1967_v60 }
 0x160   :  { %1972 = vmatprep.subr.msk.bf16.mxu1 %vm2528_vm10, %v1970_v0 }
 0x163   :  { %1975 = vmatpush1.bf16.msk.msra.mxu1 %vm2528_vm10, %v1973_v25 }
 0x164   :  { %1978 = vmatprep.subr.msk.bf16.mxu1 %vm1977_vm2, %v1976_v48  ;;  %v1089_v48 = vpop.permute.xlu1 %1088 }
 0x167   :  { %1981 = vmatpush1.bf16.msk.msra.mxu1 %vm1977_vm2, %v1979_v51 }
 0x16a   :  { %945 = vmatmul.mubr.f32.vlgmr.msra.gmra.mrb[16].mxu1 %v848_v31 }
 0x16b   :  { %950 = vmatprep.mubr.f32.mxu1 %v2124_v14 }
 0x16e   :  { %951 = vmatmul.mubr.f32.gmra.mrb[18].mxu1 %v849_v32 }
 0x16f   :  { %956 = vmatprep.mubr.f32.mxu1 %v2124_v14 }
 0x172   :  { %957 = vmatmul.mubr.f32.gmra.mrb[20].mxu1 %v850_v37 }
 0x173   :  { %962 = vmatprep.mubr.f32.mxu1 %v2124_v14 }
 0x176   :  { %963 = vmatmul.mubr.f32.gmra.mrb[22].mxu1 %v851_v39 }
 0x177   :  { %968 = vmatprep.mubr.f32.mxu1 %v2124_v14 }
 0x17a   :  { %969 = vmatmul.mubr.f32.gmra.mrb[24].mxu1 %v852_v45 }
 0x17b   :  { %974 = vmatprep.mubr.f32.mxu1 %v2124_v14 }
 0x17e   :  { %975 = vmatmul.mubr.f32.gmra.mrb[26].mxu1 %v853_v1  ;;  %v1094_v1 = vpop.permute.xlu0 %1093 }
 0x17f   :  { %980 = vmatprep.mubr.f32.mxu1 %v2124_v14 }
 0x182   :  { %981 = vmatmul.mubr.f32.gmra.mrb[28].mxu1 %v854_v47 }
 0x183   :  { %986 = vmatprep.mubr.f32.mxu1 %v2124_v14 }
 0x186   :  { %987 = vmatmul.mubr.f32.gmra.mrb[30].mxu1 %v855_v50  ;;  %v1099_v50 = vpop.permute.xlu1 %1098 }
 0x187   :  { %992 = vmatprep.mubr.f32.mxu1 %v2124_v14 }
 0x18a   :  { %993 = vmatmul.mubr.f32.gmra.mrb[32].mxu1 %v856_v52 }
 0x18b   :  { %998 = vmatprep.mubr.f32.mxu1 %v2124_v14 }
 0x18e   :  { %999 = vmatmul.mubr.f32.gmra.mrb[34].mxu1 %v857_v53 }
 0x18f   :  { %1004 = vmatprep.mubr.f32.mxu1 %v2124_v14 }
 0x192   :  { %1005 = vmatmul.mubr.f32.gmra.mrb[36].mxu1 %v858_v54 }
 0x193   :  { %1010 = vmatprep.mubr.f32.mxu1 %v2124_v14 }
 0x196   :  { %1011 = vmatmul.mubr.f32.gmra.mrb[38].mxu1 %v859_v55 }
 0x197   :  { %1016 = vmatprep.mubr.f32.mxu1 %v2124_v14 }
 0x19a   :  { %1017 = vmatmul.mubr.f32.gmra.mrb[40].mxu1 %v860_v56 }
 0x19b   :  { %1022 = vmatprep.mubr.f32.mxu1 %v2124_v14 }
 0x19e   :  { %1023 = vmatmul.mubr.f32.gmra.mrb[42].mxu1 %v861_v57 }
 0x19f   :  { %1028 = vmatprep.mubr.f32.mxu1 %v2124_v14 }
 0x1a2   :  { %1029 = vmatmul.mubr.f32.gmra.mrb[44].mxu1 %v862_v58 }
 0x1a3   :  { %1034 = vmatprep.mubr.f32.mxu1 %v2124_v14 }
 0x1a6   :  { %1035 = vmatmul.mubr.f32.gmra.mrb[46].mxu1 %v863_v4  ;;  %v1104_v4 = vpop.permute.xlu0 %1103 }
 0x1a7   :  { %1779 = vmatprep.mubr.f32.mxu1 %v2124_v14 }
 0x23d   :  { %v946_v59 = vpop.f32.mrb[16].mxu1 }
 0x23e   :  { %v948_v61 = vpop.f32.mrb[17].mxu1  ;;  %v1121_v63 = vadd.f32 %v1044_v62, %v946_v59 }
 0x240   :  { %vm1217_vm14 = vcmp.gt.f32.partialorder %v1121_v63, 0.0 }
 0x241   :  { %v952_v3 = vpop.f32.mrb[18].mxu1 }
 0x242   :  { %v1123_v5 = vadd.f32 %v1049_v2, %v952_v3  ;;  %v954_v6 = vpop.f32.mrb[19].mxu1 }
 0x243   :  { %v1982_v60 = vpack.c.bf16 %v954_v6, %v948_v61  ;;  %v1109_v61 = vpop.permute.xlu1 %1108 }
 0x244   :  { %vm1219_vm3 = vcmp.gt.f32.partialorder %v1123_v5, 0.0  ;;  %v1985_v7 = vpack.c.bf16 %v1123_v5, %v1121_v63 }
 0x245   :  { %v958_v8 = vpop.f32.mrb[20].mxu1  ;;  %vm1983_vm4 = vmpackc.low %vm1219_vm3, %vm1217_vm14 }
 0x246   :  { %v960_v9 = vpop.f32.mrb[21].mxu1  ;;  %1984 = vmatprep.subr.msk.bf16.mxu0 %vm1983_vm4, %v1982_v60  ;;  %v1125_v11 = vadd.f32 %v1054_v10, %v958_v8 }
 0x247   :  { %1987 = vmatpush1.bf16.msk.msra.mxu0 %vm1983_vm4, %v1985_v7  ;;  %v1114_v7 = vpop.permute.xlu0 %1113 }
 0x248   :  { %vm1221_vm5 = vcmp.gt.f32.partialorder %v1125_v11, 0.0 }
 0x249   :  { %v964_v13 = vpop.f32.mrb[22].mxu1 }
 0x24a   :  { %v1127_v15 = vadd.f32 %v1059_v12, %v964_v13  ;;  %v966_v16 = vpop.f32.mrb[23].mxu1 }
 0x24b   :  { %v1988_v17 = vpack.c.bf16 %v966_v16, %v960_v9  ;;  %v1119_v9 = vpop.permute.xlu1 %1118  ;;  %v1281_v16 = vld [vmem:[%s2703_s5] sm:$0xff] }
 0x24c   :  { %vm1223_vm6 = vcmp.gt.f32.partialorder %v1127_v15, 0.0  ;;  %v1991_v18 = vpack.c.bf16 %v1127_v15, %v1125_v11 }
 0x24d   :  { %v970_v19 = vpop.f32.mrb[24].mxu1  ;;  %vm1989_vm7 = vmpackc.low %vm1223_vm6, %vm1221_vm5 }
 0x24e   :  { %v972_v20 = vpop.f32.mrb[25].mxu1  ;;  %1990 = vmatprep.subr.msk.bf16.mxu0 %vm1989_vm7, %v1988_v17  ;;  %v1129_v22 = vadd.f32 %v1064_v21, %v970_v19  ;;  %v1282_v17 = vld [vmem:[%s2703_s5 + $0x8] sm:$0xff]  ;;  %v1284_v19 = vld [vmem:[%s2703_s5 + $0x18] sm:$0xff] }
 0x24f   :  { %1993 = vmatpush1.bf16.msk.msra.mxu0 %vm1989_vm7, %v1991_v18  ;;  %v1283_v18 = vld [vmem:[%s2703_s5 + $0x10] sm:$0xff]  ;;  %v1286_v21 = vld [vmem:[%s2703_s5 + $0x28] sm:$0xff] }
 0x250   :  { %vm1225_vm8 = vcmp.gt.f32.partialorder %v1129_v22, 0.0 }
 0x251   :  { %v976_v0 = vpop.f32.mrb[26].mxu1 }
 0x252   :  { %v1131_v24 = vadd.f32 %v1069_v23, %v976_v0  ;;  %v978_v25 = vpop.f32.mrb[27].mxu1  ;;  %v1288_v23 = vld [vmem:[%s2703_s5 + $0x38] sm:$0xff]  ;;  %v1289_v0 = vld [vmem:[%s2703_s5 + $0x40] sm:$0xff] }
 0x253   :  { %v1994_v26 = vpack.c.bf16 %v978_v25, %v972_v20  ;;  %v1285_v20 = vld [vmem:[%s2703_s5 + $0x20] sm:$0xff]  ;;  %v1291_v25 = vld [vmem:[%s2703_s5 + $0x50] sm:$0xff] }
 0x254   :  { %vm1227_vm9 = vcmp.gt.f32.partialorder %v1131_v24, 0.0  ;;  %v1997_v27 = vpack.c.bf16 %v1131_v24, %v1129_v22  ;;  %v1287_v22 = vld [vmem:[%s2703_s5 + $0x30] sm:$0xff]  ;;  %v1290_v24 = vld [vmem:[%s2703_s5 + $0x48] sm:$0xff] }
 0x255   :  { %v982_v28 = vpop.f32.mrb[28].mxu1  ;;  %vm1995_vm10 = vmpackc.low %vm1227_vm9, %vm1225_vm8 }
 0x256   :  { %v984_v29 = vpop.f32.mrb[29].mxu1  ;;  %1996 = vmatprep.subr.msk.bf16.mxu0 %vm1995_vm10, %v1994_v26  ;;  %v1133_v30 = vadd.f32 %v1074_v33, %v982_v28  ;;  %v1292_v26 = vld [vmem:[%s2703_s5 + $0x58] sm:$0xff]  ;;  %v1294_v28 = vld [vmem:[%s2703_s5 + $0x68] sm:$0xff] }
 0x257   :  { %1999 = vmatpush1.bf16.msk.msra.mxu0 %vm1995_vm10, %v1997_v27  ;;  %v1293_v27 = vld [vmem:[%s2703_s5 + $0x60] sm:$0xff]  ;;  %v1296_v33 = vld [vmem:[%s2703_s5 + $0x78] sm:$0xff] }
 0x258   :  { %vm1229_vm12 = vcmp.gt.f32.partialorder %v1133_v30, 0.0 }
 0x259   :  { %v988_v35 = vpop.f32.mrb[30].mxu1 }
 0x25a   :  { %v1135_v36 = vadd.f32 %v1079_v34, %v988_v35  ;;  %v990_v38 = vpop.f32.mrb[31].mxu1  ;;  %v1477_v35 = vpop.permute.xlu0 %1476 }
 0x25b   :  { %v2000_v40 = vpack.c.bf16 %v990_v38, %v984_v29  ;;  %v1295_v29 = vld [vmem:[%s2703_s5 + $0x70] sm:$0xff]  ;;  %v1482_v38 = vpop.permute.xlu1 %1481 }
 0x25c   :  { %vm1231_vm13 = vcmp.gt.f32.partialorder %v1135_v36, 0.0  ;;  %v2003_v41 = vpack.c.bf16 %v1135_v36, %v1133_v30 }
 0x25d   :  { %v994_v42 = vpop.f32.mrb[32].mxu1  ;;  %vm2001_vm15 = vmpackc.low %vm1231_vm13, %vm1229_vm12 }
 0x25e   :  { %v996_v43 = vpop.f32.mrb[33].mxu1  ;;  %2002 = vmatprep.subr.msk.bf16.mxu0 %vm2001_vm15, %v2000_v40  ;;  %v1137_v46 = vadd.f32 %v1084_v44, %v994_v42 }
 0x25f   :  { %2005 = vmatpush1.bf16.msk.msra.mxu0 %vm2001_vm15, %v2003_v41 }
 0x260   :  { %vm1233_vm0 = vcmp.gt.f32.partialorder %v1137_v46, 0.0 }
 0x261   :  { %v1000_v49 = vpop.f32.mrb[34].mxu1 }
 0x262   :  { %v1139_v51 = vadd.f32 %v1089_v48, %v1000_v49  ;;  %v1002_v31 = vpop.f32.mrb[35].mxu1  ;;  %v1487_v48 = vpop.permute.xlu0 %1486 }
 0x263   :  { %v2006_v32 = vpack.c.bf16 %v1002_v31, %v996_v43 }
 0x264   :  { %vm1235_vm1 = vcmp.gt.f32.partialorder %v1139_v51, 0.0  ;;  %v2009_v37 = vpack.c.bf16 %v1139_v51, %v1137_v46  ;;  %v1492_v51 = vpop.permute.xlu1 %1491 }
 0x265   :  { %v1006_v39 = vpop.f32.mrb[36].mxu1  ;;  %vm2007_vm2 = vmpackc.low %vm1235_vm1, %vm1233_vm0 }
 0x266   :  { %v1008_v45 = vpop.f32.mrb[37].mxu1  ;;  %2008 = vmatprep.subr.msk.bf16.mxu0 %vm2007_vm2, %v2006_v32  ;;  %v1141_v47 = vadd.f32 %v1094_v1, %v1006_v39 }
 0x267   :  { %2011 = vmatpush1.bf16.msk.msra.mxu0 %vm2007_vm2, %v2009_v37 }
 0x268   :  { %vm1237_vm14 = vcmp.gt.f32.partialorder %v1141_v47, 0.0 }
 0x269   :  { %v1012_v52 = vpop.f32.mrb[38].mxu1 }
 0x26a   :  { %v1143_v53 = vadd.f32 %v1099_v50, %v1012_v52  ;;  %v1014_v54 = vpop.f32.mrb[39].mxu1  ;;  %v1497_v50 = vpop.permute.xlu0 %1496 }
 0x26b   :  { %v2012_v55 = vpack.c.bf16 %v1014_v54, %v1008_v45 }
 0x26c   :  { %vm1239_vm3 = vcmp.gt.f32.partialorder %v1143_v53, 0.0  ;;  %v2015_v56 = vpack.c.bf16 %v1143_v53, %v1141_v47  ;;  %v1502_v53 = vpop.permute.xlu1 %1501 }
 0x26d   :  { %v1018_v57 = vpop.f32.mrb[40].mxu1  ;;  %vm2013_vm4 = vmpackc.low %vm1239_vm3, %vm1237_vm14 }
 0x26e   :  { %v1020_v58 = vpop.f32.mrb[41].mxu1  ;;  %2014 = vmatprep.subr.msk.bf16.mxu0 %vm2013_vm4, %v2012_v55  ;;  %v1145_v59 = vadd.f32 %v1104_v4, %v1018_v57 }
 0x26f   :  { %2017 = vmatpush1.bf16.msk.msra.mxu0 %vm2013_vm4, %v2015_v56 }
 0x270   :  { %vm1241_vm5 = vcmp.gt.f32.partialorder %v1145_v59, 0.0 }
 0x271   :  { %v1024_v62 = vpop.f32.mrb[42].mxu1 }
 0x272   :  { %v1147_v63 = vadd.f32 %v1109_v61, %v1024_v62  ;;  %v1026_v2 = vpop.f32.mrb[43].mxu1  ;;  %v1507_v61 = vpop.permute.xlu0 %1506 }
 0x273   :  { %v2018_v3 = vpack.c.bf16 %v1026_v2, %v1020_v58 }
 0x274   :  { %vm1243_vm6 = vcmp.gt.f32.partialorder %v1147_v63, 0.0  ;;  %v2021_v5 = vpack.c.bf16 %v1147_v63, %v1145_v59  ;;  %v1512_v63 = vpop.permute.xlu1 %1511 }
 0x275   :  { %v1030_v6 = vpop.f32.mrb[44].mxu1  ;;  %vm2019_vm7 = vmpackc.low %vm1243_vm6, %vm1241_vm5 }
 0x276   :  { %v1032_v60 = vpop.f32.mrb[45].mxu1  ;;  %2020 = vmatprep.subr.msk.bf16.mxu0 %vm2019_vm7, %v2018_v3  ;;  %v1149_v8 = vadd.f32 %v1114_v7, %v1030_v6 }
 0x277   :  { %2023 = vmatpush1.bf16.msk.msra.mxu0 %vm2019_vm7, %v2021_v5 }
 0x278   :  { %vm1245_vm8 = vcmp.gt.f32.partialorder %v1149_v8, 0.0 }
 0x279   :  { %v1036_v10 = vpop.f32.mrb[46].mxu1 }
 0x27a   :  { %v1151_v11 = vadd.f32 %v1119_v9, %v1036_v10  ;;  %v1038_v12 = vpop.f32.mrb[47].mxu1  ;;  %v1517_v9 = vpop.permute.xlu0 %1516 }
 0x27b   :  { %v2024_v13 = vpack.c.bf16 %v1038_v12, %v1032_v60 }
 0x27c   :  { %vm1247_vm9 = vcmp.gt.f32.partialorder %v1151_v11, 0.0  ;;  %v2027_v15 = vpack.c.bf16 %v1151_v11, %v1149_v8  ;;  %v1522_v11 = vpop.permute.xlu1 %1521 }
 0x27d   :  { %vm2025_vm10 = vmpackc.low %vm1247_vm9, %vm1245_vm8 }
 0x27e   :  { %2026 = vmatprep.subr.msk.bf16.mxu0 %vm2025_vm10, %v2024_v13 }
 0x27f   :  { %2029 = vmatpush1.bf16.msk.msra.mxu0 %vm2025_vm10, %v2027_v15 }
 0x282   :  { %1378 = vmatmul.mubr.f32.vlgmr.msra.gmra.mrb[16].mxu0 %v1281_v16 }
 0x283   :  { %1383 = vmatprep.mubr.f32.mxu0 %v2124_v14 }
 0x286   :  { %1384 = vmatmul.mubr.f32.gmra.mrb[18].mxu0 %v1282_v17 }
 0x287   :  { %1389 = vmatprep.mubr.f32.mxu0 %v2124_v14 }
 0x28a   :  { %1390 = vmatmul.mubr.f32.gmra.mrb[20].mxu0 %v1283_v18 }
 0x28b   :  { %1395 = vmatprep.mubr.f32.mxu0 %v2124_v14 }
 0x28e   :  { %1396 = vmatmul.mubr.f32.gmra.mrb[22].mxu0 %v1284_v19 }
 0x28f   :  { %1401 = vmatprep.mubr.f32.mxu0 %v2124_v14 }
 0x292   :  { %1402 = vmatmul.mubr.f32.gmra.mrb[24].mxu0 %v1285_v20  ;;  %v1527_v20 = vpop.permute.xlu0 %1526 }
 0x293   :  { %1407 = vmatprep.mubr.f32.mxu0 %v2124_v14 }
 0x296   :  { %1408 = vmatmul.mubr.f32.gmra.mrb[26].mxu0 %v1286_v21 }
 0x297   :  { %1413 = vmatprep.mubr.f32.mxu0 %v2124_v14 }
 0x29a   :  { %1414 = vmatmul.mubr.f32.gmra.mrb[28].mxu0 %v1287_v22  ;;  %v1532_v22 = vpop.permute.xlu1 %1531 }
 0x29b   :  { %1419 = vmatprep.mubr.f32.mxu0 %v2124_v14 }
 0x29e   :  { %1420 = vmatmul.mubr.f32.gmra.mrb[30].mxu0 %v1288_v23 }
 0x29f   :  { %1425 = vmatprep.mubr.f32.mxu0 %v2124_v14 }
 0x2a2   :  { %1426 = vmatmul.mubr.f32.gmra.mrb[32].mxu0 %v1289_v0 }
 0x2a3   :  { %1431 = vmatprep.mubr.f32.mxu0 %v2124_v14 }
 0x2a6   :  { %1432 = vmatmul.mubr.f32.gmra.mrb[34].mxu0 %v1290_v24 }
 0x2a7   :  { %1437 = vmatprep.mubr.f32.mxu0 %v2124_v14 }
 0x2aa   :  { %1438 = vmatmul.mubr.f32.gmra.mrb[36].mxu0 %v1291_v25 }
 0x2ab   :  { %1443 = vmatprep.mubr.f32.mxu0 %v2124_v14 }
 0x2ae   :  { %1444 = vmatmul.mubr.f32.gmra.mrb[38].mxu0 %v1292_v26 }
 0x2af   :  { %1449 = vmatprep.mubr.f32.mxu0 %v2124_v14 }
 0x2b2   :  { %1450 = vmatmul.mubr.f32.gmra.mrb[40].mxu0 %v1293_v27 }
 0x2b3   :  { %1455 = vmatprep.mubr.f32.mxu0 %v2124_v14 }
 0x2b6   :  { %1456 = vmatmul.mubr.f32.gmra.mrb[42].mxu0 %v1294_v28 }
 0x2b7   :  { %1461 = vmatprep.mubr.f32.mxu0 %v2124_v14 }
 0x2ba   :  { %1462 = vmatmul.mubr.f32.gmra.mrb[44].mxu0 %v1295_v29  ;;  %v1537_v29 = vpop.permute.xlu0 %1536 }
 0x2bb   :  { %1467 = vmatprep.mubr.f32.mxu0 %v2124_v14 }
 0x2be   :  { %1468 = vmatmul.mubr.f32.gmra.mrb[46].mxu0 %v1296_v33 }
 0x355   :  { %v1379_v30 = vpop.f32.mrb[16].mxu0 }
 0x356   :  { %v1381_v34 = vpop.f32.mrb[17].mxu0  ;;  %v1554_v36 = vadd.f32 %v1477_v35, %v1379_v30  ;;  %v1542_v30 = vpop.permute.xlu1 %1541 }
 0x358   :  { %vm1650_vm12 = vcmp.gt.f32.partialorder %v1554_v36, 0.0 }
 0x359   :  { %v1385_v40 = vpop.f32.mrb[18].mxu0 }
 0x35a   :  { %v1556_v41 = vadd.f32 %v1482_v38, %v1385_v40  ;;  %v1387_v42 = vpop.f32.mrb[19].mxu0 }
 0x35b   :  { %v2030_v43 = vpack.c.bf16 %v1387_v42, %v1381_v34 }
 0x35c   :  { %vm1652_vm13 = vcmp.gt.f32.partialorder %v1556_v41, 0.0  ;;  %v2033_v44 = vpack.c.bf16 %v1556_v41, %v1554_v36 }
 0x35d   :  { %v1391_v46 = vpop.f32.mrb[20].mxu0  ;;  %vm2031_vm15 = vmpackc.low %vm1652_vm13, %vm1650_vm12 }
 0x35e   :  { %v1393_v14 = vpop.f32.mrb[21].mxu0  ;;  %2032 = vmatprep.subr.msk.bf16.mxu1 %vm2031_vm15, %v2030_v43  ;;  %v1558_v49 = vadd.f32 %v1487_v48, %v1391_v46  ;;  %v1547_v43 = vpop.permute.xlu0 %1546 }
 0x35f   :  { %2035 = vmatpush1.bf16.msk.msra.mxu1 %vm2031_vm15, %v2033_v44  ;;  %v1552_v46 = vpop.permute.xlu1 %1551 }
 0x360   :  { %vm1654_vm0 = vcmp.gt.f32.partialorder %v1558_v49, 0.0 }
 0x361   :  { %v1397_v31 = vpop.f32.mrb[22].mxu0 }
 0x362   :  { %v1560_v32 = vadd.f32 %v1492_v51, %v1397_v31  ;;  %v1399_v37 = vpop.f32.mrb[23].mxu0 }
 0x363   :  { %v2036_v39 = vpack.c.bf16 %v1399_v37, %v1393_v14  ;;  %v1790_v37 = vpop.permute.xlu0 %1789 }
 0x364   :  { %vm1656_vm1 = vcmp.gt.f32.partialorder %v1560_v32, 0.0  ;;  %v2039_v45 = vpack.c.bf16 %v1560_v32, %v1558_v49  ;;  %v1714_v32 = vld [vmem:[%s2705_s7] sm:$0x3] }
 0x365   :  { %v1403_v1 = vpop.f32.mrb[24].mxu0  ;;  %vm2037_vm2 = vmpackc.low %vm1656_vm1, %vm1654_vm0 }
 0x366   :  { %v1405_v47 = vpop.f32.mrb[25].mxu0  ;;  %2038 = vmatprep.subr.msk.bf16.mxu1 %vm2037_vm2, %v2036_v39  ;;  %v1562_v52 = vadd.f32 %v1497_v50, %v1403_v1 }
 0x367   :  { %2041 = vmatpush1.bf16.msk.msra.mxu1 %vm2037_vm2, %v2039_v45 }
 0x368   :  { %vm1658_vm14 = vcmp.gt.f32.partialorder %v1562_v52, 0.0 }
 0x369   :  { %v1409_v54 = vpop.f32.mrb[26].mxu0 }
 0x36a   :  { %v1564_v55 = vadd.f32 %v1502_v53, %v1409_v54  ;;  %v1411_v56 = vpop.f32.mrb[27].mxu0 }
 0x36b   :  { %v2042_v57 = vpack.c.bf16 %v1411_v56, %v1405_v47 }
 0x36c   :  { %vm1660_vm3 = vcmp.gt.f32.partialorder %v1564_v55, 0.0  ;;  %v2045_v58 = vpack.c.bf16 %v1564_v55, %v1562_v52 }
 0x36d   :  { %v1415_v4 = vpop.f32.mrb[28].mxu0  ;;  %vm2043_vm4 = vmpackc.low %vm1660_vm3, %vm1658_vm14 }
 0x36e   :  { %v1417_v59 = vpop.f32.mrb[29].mxu0  ;;  %2044 = vmatprep.subr.msk.bf16.mxu1 %vm2043_vm4, %v2042_v57  ;;  %v1566_v62 = vadd.f32 %v1507_v61, %v1415_v4 }
 0x36f   :  { %2047 = vmatpush1.bf16.msk.msra.mxu1 %vm2043_vm4, %v2045_v58 }
 0x370   :  { %vm1662_vm5 = vcmp.gt.f32.partialorder %v1566_v62, 0.0 }
 0x371   :  { %v1421_v2 = vpop.f32.mrb[30].mxu0 }
 0x372   :  { %v1568_v3 = vadd.f32 %v1512_v63, %v1421_v2  ;;  %v1423_v5 = vpop.f32.mrb[31].mxu0 }
 0x373   :  { %v2048_v6 = vpack.c.bf16 %v1423_v5, %v1417_v59 }
 0x374   :  { %vm1664_vm6 = vcmp.gt.f32.partialorder %v1568_v3, 0.0  ;;  %v2051_v60 = vpack.c.bf16 %v1568_v3, %v1566_v62 }
 0x375   :  { %v1427_v7 = vpop.f32.mrb[32].mxu0  ;;  %vm2049_vm7 = vmpackc.low %vm1664_vm6, %vm1662_vm5 }
 0x376   :  { %v1429_v8 = vpop.f32.mrb[33].mxu0  ;;  %2050 = vmatprep.subr.msk.bf16.mxu1 %vm2049_vm7, %v2048_v6  ;;  %v1570_v10 = vadd.f32 %v1517_v9, %v1427_v7 }
 0x377   :  { %2053 = vmatpush1.bf16.msk.msra.mxu1 %vm2049_vm7, %v2051_v60 }
 0x378   :  { %vm1666_vm8 = vcmp.gt.f32.partialorder %v1570_v10, 0.0 }
 0x379   :  { %v1433_v12 = vpop.f32.mrb[34].mxu0 }
 0x37a   :  { %v1572_v13 = vadd.f32 %v1522_v11, %v1433_v12  ;;  %v1435_v15 = vpop.f32.mrb[35].mxu0 }
 0x37b   :  { %v2054_v16 = vpack.c.bf16 %v1435_v15, %v1429_v8 }
 0x37c   :  { %vm1668_vm9 = vcmp.gt.f32.partialorder %v1572_v13, 0.0  ;;  %v2057_v17 = vpack.c.bf16 %v1572_v13, %v1570_v10 }
 0x37d   :  { %v1439_v18 = vpop.f32.mrb[36].mxu0  ;;  %vm2055_vm10 = vmpackc.low %vm1668_vm9, %vm1666_vm8 }
 0x37e   :  { %v1441_v19 = vpop.f32.mrb[37].mxu0  ;;  %2056 = vmatprep.subr.msk.bf16.mxu1 %vm2055_vm10, %v2054_v16  ;;  %v1574_v21 = vadd.f32 %v1527_v20, %v1439_v18 }
 0x37f   :  { %2059 = vmatpush1.bf16.msk.msra.mxu1 %vm2055_vm10, %v2057_v17 }
 0x380   :  { %vm1670_vm12 = vcmp.gt.f32.partialorder %v1574_v21, 0.0 }
 0x381   :  { %v1445_v23 = vpop.f32.mrb[38].mxu0 }
 0x382   :  { %v1576_v0 = vadd.f32 %v1532_v22, %v1445_v23  ;;  %v1447_v24 = vpop.f32.mrb[39].mxu0 }
 0x383   :  { %v2060_v25 = vpack.c.bf16 %v1447_v24, %v1441_v19 }
 0x384   :  { %vm1672_vm13 = vcmp.gt.f32.partialorder %v1576_v0, 0.0  ;;  %v2063_v26 = vpack.c.bf16 %v1576_v0, %v1574_v21 }
 0x385   :  { %v1451_v27 = vpop.f32.mrb[40].mxu0  ;;  %vm2061_vm15 = vmpackc.low %vm1672_vm13, %vm1670_vm12 }
 0x386   :  { %v1453_v28 = vpop.f32.mrb[41].mxu0  ;;  %2062 = vmatprep.subr.msk.bf16.mxu1 %vm2061_vm15, %v2060_v25  ;;  %v1578_v33 = vadd.f32 %v1537_v29, %v1451_v27 }
 0x387   :  { %2065 = vmatpush1.bf16.msk.msra.mxu1 %vm2061_vm15, %v2063_v26 }
 0x388   :  { %vm1674_vm0 = vcmp.gt.f32.partialorder %v1578_v33, 0.0 }
 0x389   :  { %v1457_v34 = vpop.f32.mrb[42].mxu0 }
 0x38a   :  { %v1580_v35 = vadd.f32 %v1542_v30, %v1457_v34  ;;  %v1459_v36 = vpop.f32.mrb[43].mxu0 }
 0x38b   :  { %v2066_v38 = vpack.c.bf16 %v1459_v36, %v1453_v28 }
 0x38c   :  { %vm1676_vm1 = vcmp.gt.f32.partialorder %v1580_v35, 0.0  ;;  %v2069_v40 = vpack.c.bf16 %v1580_v35, %v1578_v33 }
 0x38d   :  { %v1463_v41 = vpop.f32.mrb[44].mxu0  ;;  %vm2067_vm2 = vmpackc.low %vm1676_vm1, %vm1674_vm0 }
 0x38e   :  { %v1465_v42 = vpop.f32.mrb[45].mxu0  ;;  %2068 = vmatprep.subr.msk.bf16.mxu1 %vm2067_vm2, %v2066_v38  ;;  %v1582_v44 = vadd.f32 %v1547_v43, %v1463_v41 }
 0x38f   :  { %2071 = vmatpush1.bf16.msk.msra.mxu1 %vm2067_vm2, %v2069_v40 }
 0x390   :  { %vm1678_vm14 = vcmp.gt.f32.partialorder %v1582_v44, 0.0 }
 0x391   :  { %v1469_v14 = vpop.f32.mrb[46].mxu0 }
 0x392   :  { %v1584_v48 = vadd.f32 %v1552_v46, %v1469_v14  ;;  %v1471_v49 = vpop.f32.mrb[47].mxu0 }
 0x393   :  { %v2072_v51 = vpack.c.bf16 %v1471_v49, %v1465_v42 }
 0x394   :  { %vm1680_vm3 = vcmp.gt.f32.partialorder %v1584_v48, 0.0  ;;  %v2075_v31 = vpack.c.bf16 %v1584_v48, %v1582_v44 }
 0x395   :  { %vm2073_vm4 = vmpackc.low %vm1680_vm3, %vm1678_vm14 }
 0x396   :  { %2074 = vmatprep.subr.msk.bf16.mxu1 %vm2073_vm4, %v2072_v51 }
 0x397   :  { %2077 = vmatpush1.bf16.msk.msra.mxu1 %vm2073_vm4, %v2075_v31 }
 0x39a   :  { %1780 = vmatmul.mubr.f32.vlgmr.msra.gmra.mrb[48].mxu1 %v1714_v32 }
 0x46d   :  { %v1781_v39 = vpop.f32.mrb[48].mxu1 }
 0x46e   :  { %v1792_v45 = vadd.f32 %v1790_v37, %v1781_v39  ;;  %v1783_v1 = vpop.f32.mrb[49].mxu1 }
 0x46f   :  { %v1794_v47 = vmul.f32 10.0, %v1783_v1 }
 0x470   :  { %v1793_v50 = vmul.f32 10.0, %v1792_v45 }
 0x471   :  { %v1796_v52 = vrot.slane %v1794_v47, 6 }
 0x473   :  { %v1798_v53 = vsel %vm293_vm11, %v1793_v50, %v1796_v52 }
 0x474   :  { %1799 = vst [vmem:[#allocation2] sm:$0xf] %v1798_v53 }
 0x475   :  { %2110 = shalt.err (!%p2107_p4)
}
 0x476   :  { %s2111_s30 = scalar_lea.hbm %s2707_s9, 64 }
 0x477   :  { %p2112_p5 = scmp.ne.s32.totalorder %s2707_s9, %s2111_s30  ;;  %p2115_p6 = scmp.lt.u32.totalorder %s2111_s30, %s2707_s9 }
 0x479   :  { %p2117_p7 = pnand %p2115_p6, %p2112_p5 }
 0x47b   :  { %2120 = shalt.err (!%p2117_p7)
}
 0x47c   :  { %1809 = dma.vmem_to_hbm [thread:$0]  %s1807_s28, 64, %s2707_s9, [#allocation3]  }
 0x47d   :  { %2121 = dma.done.wait [#allocation3], 64  }
 0x47e   :  { %2122 = vsyncadd [#allocation3], 4294967232 }
 0x47f   :  { %1813 = vsyncpa [#allocation3], 1 }

</bundles_post_ra>
